<compile_context>
chip_gen: v7x
topology: tpu7x:2x2x1
jax: 0.10.0
libtpu: 0.0.40
codegen_flags: <defaults>
</compile_context>

<pallas_src>
import jax
import jax.numpy as jnp
import numpy as np
from jax import lax
from jax.experimental import pallas as pl
from jax.experimental.pallas import tpu as pltpu


def _round_up(x, m):
    return ((x + m - 1) // m) * m


def make_fused_kernel(num_layers, T, B, Bp, H, Vp):
    """Fused forward kernel.

    Ref order:
      ids_ref (VMEM, (T*Bp, 1) int32; padded batch rows hold -1),
      per layer l: w_ih^T (bf16; layer 0 is the pre-projected vocab table (Vp, H)),
                   w_hh^T (H, H) bf16, bias (1, H) f32  [bias = b_ih + b_hh],
      w1^T (H, 300) bf16, b1 (1, 300) f32, w3^T (300, 2) bf16, b3 (1, 2) f32,
      wc0 (T*Bp, 2) f32, wc1 (T*Bp, 2) f32, agg (B, T*Bp) f32, b2 (1, 2) f32,
      out_ref (B, 2) f32.
    """

    def kernel(ids_ref, *refs):
        refs = list(refs)
        layer_refs = [refs[3 * l: 3 * (l + 1)] for l in range(num_layers)]
        k = 3 * num_layers
        (w1_ref, b1_ref, w3_ref, b3_ref,
         wc0_ref, wc1_ref, agg_ref, b2_ref) = refs[k:k + 8]
        out_ref = refs[k + 8]

        # ---- 1. Embedding gather + layer-0 input projection: ONE MXU matmul.
        # one-hot rows for padded batch entries (id == -1) are all-zero, so no
        # explicit clear is needed and padding cannot leak into real rows.
        ids = ids_ref[...]                                       # (T*Bp, 1) i32
        iota = lax.broadcasted_iota(jnp.int32, (T * Bp, Vp), 1)  # lanes = vocab
        onehot = (iota == ids).astype(jnp.bfloat16)              # (T*Bp, Vp)

        # ---- 2. Stacked Elman RNN (tanh, h0 = 0) ---------------------------
        # Input projection hoisted out of the serial time loop; the recurrence
        # runs entirely on register values (no per-step VMEM stores on the
        # latency-bound chain).  T is small & static -> Python-unrolled.
        seq = None                                               # (T*Bp, H) f32
        for l in range(num_layers):
            wih_ref, whh_ref, bias_ref = layer_refs[l]
            xin = onehot if l == 0 else seq.astype(jnp.bfloat16)
            xproj = jnp.dot(xin, wih_ref[...],
                            preferred_element_type=jnp.float32) + bias_ref[...]
            whh = whh_ref[...]                                   # (H, H) bf16
            h = jnp.zeros((Bp, H), jnp.float32)
            hs = []
            for t in range(T):
                xp = xproj[t * Bp:(t + 1) * Bp, :]               # static slice
                h = jnp.tanh(xp + jnp.dot(h.astype(jnp.bfloat16), whh,
                                          preferred_element_type=jnp.float32))
                hs.append(h)
            seq = jnp.concatenate(hs, axis=0)                    # tile-aligned

        # ---- 3. Linear1 (H -> 300) and Linear3 (300 -> 2), on values -------
        y1 = jnp.dot(seq.astype(jnp.bfloat16), w1_ref[...],
                     preferred_element_type=jnp.float32) + b1_ref[...]
        y3 = jnp.dot(y1.astype(jnp.bfloat16), w3_ref[...],
                     preferred_element_type=jnp.float32) + b3_ref[...]  # (T*Bp,2)

        # ---- 4+5. torch `.view([B, 2T])` + Linear2, folded ------------------
        #   y2[b,o] = b2[o] + sum_{(t,bb): (t*B+bb)//T == b, c} y3[t*Bp+bb, c]
        #                          * w2[o, 2*((t*B+bb)%T) + c]
        # wc0/wc1 carry the row-dependent w2 slices, agg the (b <- rows) sum;
        # padded batch rows have zero wc/agg columns.  Exactly reproduces the
        # batch-mixing view of the PyTorch module without any scatter.
        z = y3[:, 0:1] * wc0_ref[...] + y3[:, 1:2] * wc1_ref[...]   # (T*Bp, 2)
        y2 = jnp.dot(agg_ref[...], z,
                     preferred_element_type=jnp.float32) + b2_ref[...]  # (B, 2)

        # softmax(dim=1), f32 throughout
        y2 = y2 - jnp.max(y2, axis=1, keepdims=True)
        e = jnp.exp(y2)
        out_ref[...] = e / jnp.sum(e, axis=1, keepdims=True)

    return kernel


def make_rnn_imdb_forward(*, vocabulary_len, batch_size, text_size, input_size,
                          hidden_size, num_layers):
    del input_size  # folded into the pre-projected table
    T, B, H = text_size, batch_size, hidden_size
    Bp = _round_up(B, 8)                      # 8-sublane batch padding
    Vp = _round_up(vocabulary_len + 1, 128)   # lane-aligned one-hot contraction

    kernel = make_fused_kernel(num_layers, T, B, Bp, H, Vp)

    n_inputs = 1 + 3 * num_layers + 8
    call = pl.pallas_call(
        kernel,
        out_shape=jax.ShapeDtypeStruct((B, 2), jnp.float32),
        in_specs=[pl.BlockSpec(memory_space=pltpu.MemorySpace.VMEM)] * n_inputs,
        out_specs=pl.BlockSpec(memory_space=pltpu.MemorySpace.VMEM),
    )

    @jax.jit
    def forward(context, flat_params):
        ctx = context.astype(jnp.int32)                      # (T, B)
        ids = jnp.full((T, Bp), -1, jnp.int32).at[:, :B].set(ctx)
        ids = ids.reshape(T * Bp, 1)                         # flat, lane dim = 1
        return call(ids, *flat_params)

    return forward


def prepare_inputs(params, *, num_layers, text_size, batch_size):
    """One-time parameter prep: transposes, bias folds, layer-0 projection fold,
    bf16 weight casts and the view+Linear2 fold — all out of the per-call path."""
    f32, bf16 = jnp.float32, jnp.bfloat16
    T, B = text_size, batch_size
    Bp = _round_up(B, 8)

    emb = np.asarray(params["embedding"], np.float32)        # (V+1, In)
    V1 = emb.shape[0]
    Vp = _round_up(V1, 128)
    H = np.asarray(params["w_hh_l0"]).shape[0]

    flat = []
    # layer 0: fold the input projection into a vocab-padded (Vp, H) table
    w_ih0 = np.asarray(params["w_ih_l0"], np.float32)        # (H, In)
    tproj0 = np.zeros((Vp, H), np.float32)
    tproj0[:V1] = emb @ w_ih0.T
    flat.append(jnp.asarray(tproj0, bf16))
    flat.append(jnp.asarray(np.asarray(params["w_hh_l0"]).T, bf16))
    flat.append(jnp.asarray((np.asarray(params["b_ih_l0"])
                             + np.asarray(params["b_hh_l0"]))[None, :], f32))
    for l in range(1, num_layers):
        flat.append(jnp.asarray(np.asarray(params[f"w_ih_l{l}"]).T, bf16))
        flat.append(jnp.asarray(np.asarray(params[f"w_hh_l{l}"]).T, bf16))
        flat.append(jnp.asarray((np.asarray(params[f"b_ih_l{l}"])
                                 + np.asarray(params[f"b_hh_l{l}"]))[None, :], f32))

    flat.append(jnp.asarray(np.asarray(params["w1"]).T, bf16))
    flat.append(jnp.asarray(np.asarray(params["b1"])[None, :], f32))
    flat.append(jnp.asarray(np.asarray(params["w3"]).T, bf16))
    flat.append(jnp.asarray(np.asarray(params["b3"])[None, :], f32))

    # Fold the row-major (T, B, 2) -> (B, 2T) view into Linear2:
    #   wc_c[r, o] = w2[o, 2*((t*B+bb)%T) + c],  agg[b, r] = [ (t*B+bb)//T == b ]
    # for real rows r = t*Bp + bb (bb < B); padded rows stay zero.
    w2 = np.asarray(params["w2"], np.float32)                # (2, 2T)
    wc = np.zeros((2, T * Bp, 2), np.float32)
    agg = np.zeros((B, T * Bp), np.float32)
    for t in range(T):
        for bb in range(B):
            r = t * Bp + bb
            g = t * B + bb
            agg[g // T, r] = 1.0
            m = g % T
            wc[0, r, :] = w2[:, 2 * m + 0]
            wc[1, r, :] = w2[:, 2 * m + 1]
    flat.append(jnp.asarray(wc[0], f32))
    flat.append(jnp.asarray(wc[1], f32))
    flat.append(jnp.asarray(agg, f32))
    flat.append(jnp.asarray(np.asarray(params["b2"])[None, :], f32))
    return flat


def init_params(key, vocabulary_len, text_size, input_size, hidden_size, num_layers):
    p = {}
    keys = iter(jax.random.split(key, 1 + 4 * num_layers + 6))

    emb = jax.random.normal(next(keys), (vocabulary_len + 1, input_size), jnp.float32)
    emb = emb.at[vocabulary_len].set(0.0)       # padding_idx row is zero, as in torch
    p["embedding"] = emb

    for l in range(num_layers):
        in_f = input_size if l == 0 else hidden_size
        bd = 1.0 / (hidden_size ** 0.5)
        p[f"w_ih_l{l}"] = jax.random.uniform(next(keys), (hidden_size, in_f), jnp.float32, -bd, bd)
        p[f"w_hh_l{l}"] = jax.random.uniform(next(keys), (hidden_size, hidden_size), jnp.float32, -bd, bd)
        p[f"b_ih_l{l}"] = jax.random.uniform(next(keys), (hidden_size,), jnp.float32, -bd, bd)
        p[f"b_hh_l{l}"] = jax.random.uniform(next(keys), (hidden_size,), jnp.float32, -bd, bd)

    b1 = 1.0 / (hidden_size ** 0.5)
    p["w1"] = jax.random.uniform(next(keys), (300, hidden_size), jnp.float32, -b1, b1)
    p["b1"] = jax.random.uniform(next(keys), (300,), jnp.float32, -b1, b1)

    b3 = 1.0 / (300.0 ** 0.5)
    p["w3"] = jax.random.uniform(next(keys), (2, 300), jnp.float32, -b3, b3)
    p["b3"] = jax.random.uniform(next(keys), (2,), jnp.float32, -b3, b3)

    b2 = 1.0 / ((text_size * 2.0) ** 0.5)
    p["w2"] = jax.random.uniform(next(keys), (2, text_size * 2), jnp.float32, -b2, b2)
    p["b2"] = jax.random.uniform(next(keys), (2,), jnp.float32, -b2, b2)
    return p


def reference_forward(params, context, *, num_layers, batch_size, text_size, hidden_size):
    """Pure-JAX f32 reference mirroring the PyTorch forward."""
    T, B = context.shape
    x = params["embedding"][context].astype(jnp.float32)
    for l in range(num_layers):
        wih, whh = params[f"w_ih_l{l}"], params[f"w_hh_l{l}"]
        bih, bhh = params[f"b_ih_l{l}"], params[f"b_hh_l{l}"]
        h = jnp.zeros((B, hidden_size), jnp.float32)
        outs = []
        for t in range(T):
            h = jnp.tanh(x[t] @ wih.T + bih + h @ whh.T + bhh)
            outs.append(h)
        x = jnp.stack(outs, axis=0)
    y1 = x @ params["w1"].T + params["b1"]
    y3 = y1 @ params["w3"].T + params["b3"]
    v = y3.reshape(batch_size, text_size * 2)
    y2 = v @ params["w2"].T + params["b2"]
    return jax.nn.softmax(y2, axis=1)


if __name__ == "__main__":
    vocabulary_len = 50
    batch_size = 2
    text_size = 8          # sequence length T (== text_size, required by the .view)
    input_size = 16
    hidden_size = 32
    num_layers = 2

    key = jax.random.PRNGKey(0)
    kp, kc = jax.random.split(key)
    params = init_params(kp, vocabulary_len, text_size, input_size, hidden_size, num_layers)
    context = jax.random.randint(kc, (text_size, batch_size), 0, vocabulary_len + 1,
                                 dtype=jnp.int32)

    forward = make_rnn_imdb_forward(
        vocabulary_len=vocabulary_len, batch_size=batch_size, text_size=text_size,
        input_size=input_size, hidden_size=hidden_size, num_layers=num_layers)
    flat = prepare_inputs(params, num_layers=num_layers,
                          text_size=text_size, batch_size=batch_size)

    out = jax.block_until_ready(forward(context, flat))

    ref = reference_forward(params, context, num_layers=num_layers,
                            batch_size=batch_size, text_size=text_size,
                            hidden_size=hidden_size)
    assert out.shape == (batch_size, 2)
    # Kernel feeds the MXU bf16 operands (f32 accumulation); reference is pure f32,
    # hence the slightly looser tolerance than an all-f32 comparison.
    if not bool(jnp.allclose(out, ref, atol=1e-2, rtol=1e-2)):
        raise AssertionError("Pallas kernel output mismatch vs JAX reference")
    print("KERNEL_OK")
</pallas_src>

<mosaic_0001>
module attributes {stable_mosaic.version = 11 : i64} {
  func.func @kernel(%arg0: memref<64x1xi32, #tpu.memory_space<vmem>>, %arg1: memref<128x32xbf16, #tpu.memory_space<vmem>>, %arg2: memref<32x32xbf16, #tpu.memory_space<vmem>>, %arg3: memref<1x32xf32, #tpu.memory_space<vmem>>, %arg4: memref<32x32xbf16, #tpu.memory_space<vmem>>, %arg5: memref<32x32xbf16, #tpu.memory_space<vmem>>, %arg6: memref<1x32xf32, #tpu.memory_space<vmem>>, %arg7: memref<32x300xbf16, #tpu.memory_space<vmem>>, %arg8: memref<1x300xf32, #tpu.memory_space<vmem>>, %arg9: memref<300x2xbf16, #tpu.memory_space<vmem>>, %arg10: memref<1x2xf32, #tpu.memory_space<vmem>>, %arg11: memref<64x2xf32, #tpu.memory_space<vmem>>, %arg12: memref<64x2xf32, #tpu.memory_space<vmem>>, %arg13: memref<2x64xf32, #tpu.memory_space<vmem>>, %arg14: memref<1x2xf32, #tpu.memory_space<vmem>>, %arg15: memref<2x2xf32, #tpu.memory_space<vmem>>) attributes {dimension_semantics = [], scalar_prefetch = 0 : i64, scratch_operands = 0 : i64, tpu.core_type = #tpu.core_type<tc>} {
    %c0 = arith.constant 0 : index
    %c0_0 = arith.constant 0 : index
    %0 = vector.load %arg0[%c0, %c0_0] : memref<64x1xi32, #tpu.memory_space<vmem>>, vector<64x1xi32>
    %1 = tpu.iota {dimensions = array<i32: 1>} : vector<64x128xi32>
    %2 = vector.broadcast %0 : vector<64x1xi32> to vector<64x128xi32>
    %3 = arith.cmpi eq, %1, %2 : vector<64x128xi32>
    %4 = arith.extui %3 : vector<64x128xi1> to vector<64x128xi32>
    %5 = arith.sitofp %4 : vector<64x128xi32> to vector<64x128xf32>
    %6 = arith.truncf %5 : vector<64x128xf32> to vector<64x128xbf16>
    %c0_1 = arith.constant 0 : index
    %c0_2 = arith.constant 0 : index
    %7 = vector.load %arg1[%c0_1, %c0_2] : memref<128x32xbf16, #tpu.memory_space<vmem>>, vector<128x32xbf16>
    %cst = arith.constant dense<0.000000e+00> : vector<64x32xf32>
    %8 = tpu.matmul %6, %7, %cst {dimension_numbers = #tpu.dot_dimension_numbers<[1], [0], [0], [1], [0, 0, 1, 1], [], []>} : vector<64x128xbf16>, vector<128x32xbf16>, vector<64x32xf32> -> vector<64x32xf32>
    %c0_3 = arith.constant 0 : index
    %c0_4 = arith.constant 0 : index
    %9 = vector.load %arg3[%c0_3, %c0_4] : memref<1x32xf32, #tpu.memory_space<vmem>>, vector<1x32xf32>
    %10 = vector.broadcast %9 : vector<1x32xf32> to vector<64x32xf32>
    %11 = arith.addf %8, %10 : vector<64x32xf32>
    %c0_5 = arith.constant 0 : index
    %c0_6 = arith.constant 0 : index
    %12 = vector.load %arg2[%c0_5, %c0_6] : memref<32x32xbf16, #tpu.memory_space<vmem>>, vector<32x32xbf16>
    %cst_7 = arith.constant 0.000000e+00 : f32
    %13 = vector.broadcast %cst_7 : f32 to vector<8x32xf32>
    %14 = vector.extract_strided_slice %11 {offsets = [0, 0], sizes = [8, 32], strides = [1, 1]} : vector<64x32xf32> to vector<8x32xf32>
    %15 = arith.truncf %13 : vector<8x32xf32> to vector<8x32xbf16>
    %cst_8 = arith.constant dense<0.000000e+00> : vector<8x32xf32>
    %16 = tpu.matmul %15, %12, %cst_8 {dimension_numbers = #tpu.dot_dimension_numbers<[1], [0], [0], [1], [0, 0, 1, 1], [], []>} : vector<8x32xbf16>, vector<32x32xbf16>, vector<8x32xf32> -> vector<8x32xf32>
    %17 = arith.addf %14, %16 : vector<8x32xf32>
    %18 = math.tanh %17 : vector<8x32xf32>
    %19 = vector.extract_strided_slice %11 {offsets = [8, 0], sizes = [8, 32], strides = [1, 1]} : vector<64x32xf32> to vector<8x32xf32>
    %20 = arith.truncf %18 : vector<8x32xf32> to vector<8x32xbf16>
    %cst_9 = arith.constant dense<0.000000e+00> : vector<8x32xf32>
    %21 = tpu.matmul %20, %12, %cst_9 {dimension_numbers = #tpu.dot_dimension_numbers<[1], [0], [0], [1], [0, 0, 1, 1], [], []>} : vector<8x32xbf16>, vector<32x32xbf16>, vector<8x32xf32> -> vector<8x32xf32>
    %22 = arith.addf %19, %21 : vector<8x32xf32>
    %23 = math.tanh %22 : vector<8x32xf32>
    %24 = vector.extract_strided_slice %11 {offsets = [16, 0], sizes = [8, 32], strides = [1, 1]} : vector<64x32xf32> to vector<8x32xf32>
    %25 = arith.truncf %23 : vector<8x32xf32> to vector<8x32xbf16>
    %cst_10 = arith.constant dense<0.000000e+00> : vector<8x32xf32>
    %26 = tpu.matmul %25, %12, %cst_10 {dimension_numbers = #tpu.dot_dimension_numbers<[1], [0], [0], [1], [0, 0, 1, 1], [], []>} : vector<8x32xbf16>, vector<32x32xbf16>, vector<8x32xf32> -> vector<8x32xf32>
    %27 = arith.addf %24, %26 : vector<8x32xf32>
    %28 = math.tanh %27 : vector<8x32xf32>
    %29 = vector.extract_strided_slice %11 {offsets = [24, 0], sizes = [8, 32], strides = [1, 1]} : vector<64x32xf32> to vector<8x32xf32>
    %30 = arith.truncf %28 : vector<8x32xf32> to vector<8x32xbf16>
    %cst_11 = arith.constant dense<0.000000e+00> : vector<8x32xf32>
    %31 = tpu.matmul %30, %12, %cst_11 {dimension_numbers = #tpu.dot_dimension_numbers<[1], [0], [0], [1], [0, 0, 1, 1], [], []>} : vector<8x32xbf16>, vector<32x32xbf16>, vector<8x32xf32> -> vector<8x32xf32>
    %32 = arith.addf %29, %31 : vector<8x32xf32>
    %33 = math.tanh %32 : vector<8x32xf32>
    %34 = vector.extract_strided_slice %11 {offsets = [32, 0], sizes = [8, 32], strides = [1, 1]} : vector<64x32xf32> to vector<8x32xf32>
    %35 = arith.truncf %33 : vector<8x32xf32> to vector<8x32xbf16>
    %cst_12 = arith.constant dense<0.000000e+00> : vector<8x32xf32>
    %36 = tpu.matmul %35, %12, %cst_12 {dimension_numbers = #tpu.dot_dimension_numbers<[1], [0], [0], [1], [0, 0, 1, 1], [], []>} : vector<8x32xbf16>, vector<32x32xbf16>, vector<8x32xf32> -> vector<8x32xf32>
    %37 = arith.addf %34, %36 : vector<8x32xf32>
    %38 = math.tanh %37 : vector<8x32xf32>
    %39 = vector.extract_strided_slice %11 {offsets = [40, 0], sizes = [8, 32], strides = [1, 1]} : vector<64x32xf32> to vector<8x32xf32>
    %40 = arith.truncf %38 : vector<8x32xf32> to vector<8x32xbf16>
    %cst_13 = arith.constant dense<0.000000e+00> : vector<8x32xf32>
    %41 = tpu.matmul %40, %12, %cst_13 {dimension_numbers = #tpu.dot_dimension_numbers<[1], [0], [0], [1], [0, 0, 1, 1], [], []>} : vector<8x32xbf16>, vector<32x32xbf16>, vector<8x32xf32> -> vector<8x32xf32>
    %42 = arith.addf %39, %41 : vector<8x32xf32>
    %43 = math.tanh %42 : vector<8x32xf32>
    %44 = vector.extract_strided_slice %11 {offsets = [48, 0], sizes = [8, 32], strides = [1, 1]} : vector<64x32xf32> to vector<8x32xf32>
    %45 = arith.truncf %43 : vector<8x32xf32> to vector<8x32xbf16>
    %cst_14 = arith.constant dense<0.000000e+00> : vector<8x32xf32>
    %46 = tpu.matmul %45, %12, %cst_14 {dimension_numbers = #tpu.dot_dimension_numbers<[1], [0], [0], [1], [0, 0, 1, 1], [], []>} : vector<8x32xbf16>, vector<32x32xbf16>, vector<8x32xf32> -> vector<8x32xf32>
    %47 = arith.addf %44, %46 : vector<8x32xf32>
    %48 = math.tanh %47 : vector<8x32xf32>
    %49 = vector.extract_strided_slice %11 {offsets = [56, 0], sizes = [8, 32], strides = [1, 1]} : vector<64x32xf32> to vector<8x32xf32>
    %50 = arith.truncf %48 : vector<8x32xf32> to vector<8x32xbf16>
    %cst_15 = arith.constant dense<0.000000e+00> : vector<8x32xf32>
    %51 = tpu.matmul %50, %12, %cst_15 {dimension_numbers = #tpu.dot_dimension_numbers<[1], [0], [0], [1], [0, 0, 1, 1], [], []>} : vector<8x32xbf16>, vector<32x32xbf16>, vector<8x32xf32> -> vector<8x32xf32>
    %52 = arith.addf %49, %51 : vector<8x32xf32>
    %53 = math.tanh %52 : vector<8x32xf32>
    %54 = tpu.concatenate %18, %23, %28, %33, %38, %43, %48, %53 in 0 : vector<8x32xf32>, vector<8x32xf32>, vector<8x32xf32>, vector<8x32xf32>, vector<8x32xf32>, vector<8x32xf32>, vector<8x32xf32>, vector<8x32xf32> -> vector<64x32xf32>
    %55 = arith.truncf %54 : vector<64x32xf32> to vector<64x32xbf16>
    %c0_16 = arith.constant 0 : index
    %c0_17 = arith.constant 0 : index
    %56 = vector.load %arg4[%c0_16, %c0_17] : memref<32x32xbf16, #tpu.memory_space<vmem>>, vector<32x32xbf16>
    %cst_18 = arith.constant dense<0.000000e+00> : vector<64x32xf32>
    %57 = tpu.matmul %55, %56, %cst_18 {dimension_numbers = #tpu.dot_dimension_numbers<[1], [0], [0], [1], [0, 0, 1, 1], [], []>} : vector<64x32xbf16>, vector<32x32xbf16>, vector<64x32xf32> -> vector<64x32xf32>
    %c0_19 = arith.constant 0 : index
    %c0_20 = arith.constant 0 : index
    %58 = vector.load %arg6[%c0_19, %c0_20] : memref<1x32xf32, #tpu.memory_space<vmem>>, vector<1x32xf32>
    %59 = vector.broadcast %58 : vector<1x32xf32> to vector<64x32xf32>
    %60 = arith.addf %57, %59 : vector<64x32xf32>
    %c0_21 = arith.constant 0 : index
    %c0_22 = arith.constant 0 : index
    %61 = vector.load %arg5[%c0_21, %c0_22] : memref<32x32xbf16, #tpu.memory_space<vmem>>, vector<32x32xbf16>
    %cst_23 = arith.constant 0.000000e+00 : f32
    %62 = vector.broadcast %cst_23 : f32 to vector<8x32xf32>
    %63 = vector.extract_strided_slice %60 {offsets = [0, 0], sizes = [8, 32], strides = [1, 1]} : vector<64x32xf32> to vector<8x32xf32>
    %64 = arith.truncf %62 : vector<8x32xf32> to vector<8x32xbf16>
    %cst_24 = arith.constant dense<0.000000e+00> : vector<8x32xf32>
    %65 = tpu.matmul %64, %61, %cst_24 {dimension_numbers = #tpu.dot_dimension_numbers<[1], [0], [0], [1], [0, 0, 1, 1], [], []>} : vector<8x32xbf16>, vector<32x32xbf16>, vector<8x32xf32> -> vector<8x32xf32>
    %66 = arith.addf %63, %65 : vector<8x32xf32>
    %67 = math.tanh %66 : vector<8x32xf32>
    %68 = vector.extract_strided_slice %60 {offsets = [8, 0], sizes = [8, 32], strides = [1, 1]} : vector<64x32xf32> to vector<8x32xf32>
    %69 = arith.truncf %67 : vector<8x32xf32> to vector<8x32xbf16>
    %cst_25 = arith.constant dense<0.000000e+00> : vector<8x32xf32>
    %70 = tpu.matmul %69, %61, %cst_25 {dimension_numbers = #tpu.dot_dimension_numbers<[1], [0], [0], [1], [0, 0, 1, 1], [], []>} : vector<8x32xbf16>, vector<32x32xbf16>, vector<8x32xf32> -> vector<8x32xf32>
    %71 = arith.addf %68, %70 : vector<8x32xf32>
    %72 = math.tanh %71 : vector<8x32xf32>
    %73 = vector.extract_strided_slice %60 {offsets = [16, 0], sizes = [8, 32], strides = [1, 1]} : vector<64x32xf32> to vector<8x32xf32>
    %74 = arith.truncf %72 : vector<8x32xf32> to vector<8x32xbf16>
    %cst_26 = arith.constant dense<0.000000e+00> : vector<8x32xf32>
    %75 = tpu.matmul %74, %61, %cst_26 {dimension_numbers = #tpu.dot_dimension_numbers<[1], [0], [0], [1], [0, 0, 1, 1], [], []>} : vector<8x32xbf16>, vector<32x32xbf16>, vector<8x32xf32> -> vector<8x32xf32>
    %76 = arith.addf %73, %75 : vector<8x32xf32>
    %77 = math.tanh %76 : vector<8x32xf32>
    %78 = vector.extract_strided_slice %60 {offsets = [24, 0], sizes = [8, 32], strides = [1, 1]} : vector<64x32xf32> to vector<8x32xf32>
    %79 = arith.truncf %77 : vector<8x32xf32> to vector<8x32xbf16>
    %cst_27 = arith.constant dense<0.000000e+00> : vector<8x32xf32>
    %80 = tpu.matmul %79, %61, %cst_27 {dimension_numbers = #tpu.dot_dimension_numbers<[1], [0], [0], [1], [0, 0, 1, 1], [], []>} : vector<8x32xbf16>, vector<32x32xbf16>, vector<8x32xf32> -> vector<8x32xf32>
    %81 = arith.addf %78, %80 : vector<8x32xf32>
    %82 = math.tanh %81 : vector<8x32xf32>
    %83 = vector.extract_strided_slice %60 {offsets = [32, 0], sizes = [8, 32], strides = [1, 1]} : vector<64x32xf32> to vector<8x32xf32>
    %84 = arith.truncf %82 : vector<8x32xf32> to vector<8x32xbf16>
    %cst_28 = arith.constant dense<0.000000e+00> : vector<8x32xf32>
    %85 = tpu.matmul %84, %61, %cst_28 {dimension_numbers = #tpu.dot_dimension_numbers<[1], [0], [0], [1], [0, 0, 1, 1], [], []>} : vector<8x32xbf16>, vector<32x32xbf16>, vector<8x32xf32> -> vector<8x32xf32>
    %86 = arith.addf %83, %85 : vector<8x32xf32>
    %87 = math.tanh %86 : vector<8x32xf32>
    %88 = vector.extract_strided_slice %60 {offsets = [40, 0], sizes = [8, 32], strides = [1, 1]} : vector<64x32xf32> to vector<8x32xf32>
    %89 = arith.truncf %87 : vector<8x32xf32> to vector<8x32xbf16>
    %cst_29 = arith.constant dense<0.000000e+00> : vector<8x32xf32>
    %90 = tpu.matmul %89, %61, %cst_29 {dimension_numbers = #tpu.dot_dimension_numbers<[1], [0], [0], [1], [0, 0, 1, 1], [], []>} : vector<8x32xbf16>, vector<32x32xbf16>, vector<8x32xf32> -> vector<8x32xf32>
    %91 = arith.addf %88, %90 : vector<8x32xf32>
    %92 = math.tanh %91 : vector<8x32xf32>
    %93 = vector.extract_strided_slice %60 {offsets = [48, 0], sizes = [8, 32], strides = [1, 1]} : vector<64x32xf32> to vector<8x32xf32>
    %94 = arith.truncf %92 : vector<8x32xf32> to vector<8x32xbf16>
    %cst_30 = arith.constant dense<0.000000e+00> : vector<8x32xf32>
    %95 = tpu.matmul %94, %61, %cst_30 {dimension_numbers = #tpu.dot_dimension_numbers<[1], [0], [0], [1], [0, 0, 1, 1], [], []>} : vector<8x32xbf16>, vector<32x32xbf16>, vector<8x32xf32> -> vector<8x32xf32>
    %96 = arith.addf %93, %95 : vector<8x32xf32>
    %97 = math.tanh %96 : vector<8x32xf32>
    %98 = vector.extract_strided_slice %60 {offsets = [56, 0], sizes = [8, 32], strides = [1, 1]} : vector<64x32xf32> to vector<8x32xf32>
    %99 = arith.truncf %97 : vector<8x32xf32> to vector<8x32xbf16>
    %cst_31 = arith.constant dense<0.000000e+00> : vector<8x32xf32>
    %100 = tpu.matmul %99, %61, %cst_31 {dimension_numbers = #tpu.dot_dimension_numbers<[1], [0], [0], [1], [0, 0, 1, 1], [], []>} : vector<8x32xbf16>, vector<32x32xbf16>, vector<8x32xf32> -> vector<8x32xf32>
    %101 = arith.addf %98, %100 : vector<8x32xf32>
    %102 = math.tanh %101 : vector<8x32xf32>
    %103 = tpu.concatenate %67, %72, %77, %82, %87, %92, %97, %102 in 0 : vector<8x32xf32>, vector<8x32xf32>, vector<8x32xf32>, vector<8x32xf32>, vector<8x32xf32>, vector<8x32xf32>, vector<8x32xf32>, vector<8x32xf32> -> vector<64x32xf32>
    %104 = arith.truncf %103 : vector<64x32xf32> to vector<64x32xbf16>
    %c0_32 = arith.constant 0 : index
    %c0_33 = arith.constant 0 : index
    %105 = vector.load %arg7[%c0_32, %c0_33] : memref<32x300xbf16, #tpu.memory_space<vmem>>, vector<32x300xbf16>
    %cst_34 = arith.constant dense<0.000000e+00> : vector<64x300xf32>
    %106 = tpu.matmul %104, %105, %cst_34 {dimension_numbers = #tpu.dot_dimension_numbers<[1], [0], [0], [1], [0, 0, 1, 1], [], []>} : vector<64x32xbf16>, vector<32x300xbf16>, vector<64x300xf32> -> vector<64x300xf32>
    %c0_35 = arith.constant 0 : index
    %c0_36 = arith.constant 0 : index
    %107 = vector.load %arg8[%c0_35, %c0_36] : memref<1x300xf32, #tpu.memory_space<vmem>>, vector<1x300xf32>
    %108 = vector.broadcast %107 : vector<1x300xf32> to vector<64x300xf32>
    %109 = arith.addf %106, %108 : vector<64x300xf32>
    %110 = arith.truncf %109 : vector<64x300xf32> to vector<64x300xbf16>
    %c0_37 = arith.constant 0 : index
    %c0_38 = arith.constant 0 : index
    %111 = vector.load %arg9[%c0_37, %c0_38] : memref<300x2xbf16, #tpu.memory_space<vmem>>, vector<300x2xbf16>
    %cst_39 = arith.constant dense<0.000000e+00> : vector<64x2xf32>
    %112 = tpu.matmul %110, %111, %cst_39 {dimension_numbers = #tpu.dot_dimension_numbers<[1], [0], [0], [1], [0, 0, 1, 1], [], []>} : vector<64x300xbf16>, vector<300x2xbf16>, vector<64x2xf32> -> vector<64x2xf32>
    %c0_40 = arith.constant 0 : index
    %c0_41 = arith.constant 0 : index
    %113 = vector.load %arg10[%c0_40, %c0_41] : memref<1x2xf32, #tpu.memory_space<vmem>>, vector<1x2xf32>
    %114 = vector.broadcast %113 : vector<1x2xf32> to vector<64x2xf32>
    %115 = arith.addf %112, %114 : vector<64x2xf32>
    %116 = vector.extract_strided_slice %115 {offsets = [0, 0], sizes = [64, 1], strides = [1, 1]} : vector<64x2xf32> to vector<64x1xf32>
    %c0_42 = arith.constant 0 : index
    %c0_43 = arith.constant 0 : index
    %117 = vector.load %arg11[%c0_42, %c0_43] : memref<64x2xf32, #tpu.memory_space<vmem>>, vector<64x2xf32>
    %118 = vector.broadcast %116 : vector<64x1xf32> to vector<64x2xf32>
    %119 = arith.mulf %118, %117 : vector<64x2xf32>
    %120 = vector.extract_strided_slice %115 {offsets = [0, 1], sizes = [64, 1], strides = [1, 1]} : vector<64x2xf32> to vector<64x1xf32>
    %c0_44 = arith.constant 0 : index
    %c0_45 = arith.constant 0 : index
    %121 = vector.load %arg12[%c0_44, %c0_45] : memref<64x2xf32, #tpu.memory_space<vmem>>, vector<64x2xf32>
    %122 = vector.broadcast %120 : vector<64x1xf32> to vector<64x2xf32>
    %123 = arith.mulf %122, %121 : vector<64x2xf32>
    %124 = arith.addf %119, %123 : vector<64x2xf32>
    %c0_46 = arith.constant 0 : index
    %c0_47 = arith.constant 0 : index
    %125 = vector.load %arg13[%c0_46, %c0_47] : memref<2x64xf32, #tpu.memory_space<vmem>>, vector<2x64xf32>
    %cst_48 = arith.constant dense<0.000000e+00> : vector<2x2xf32>
    %126 = tpu.matmul %125, %124, %cst_48 {dimension_numbers = #tpu.dot_dimension_numbers<[1], [0], [0], [1], [0, 0, 1, 1], [], []>} : vector<2x64xf32>, vector<64x2xf32>, vector<2x2xf32> -> vector<2x2xf32>
    %c0_49 = arith.constant 0 : index
    %c0_50 = arith.constant 0 : index
    %127 = vector.load %arg14[%c0_49, %c0_50] : memref<1x2xf32, #tpu.memory_space<vmem>>, vector<1x2xf32>
    %128 = vector.broadcast %127 : vector<1x2xf32> to vector<2x2xf32>
    %129 = arith.addf %126, %128 : vector<2x2xf32>
    %cst_51 = arith.constant dense<0xFF800000> : vector<2xf32>
    %130 = vector.multi_reduction <maximumf>, %129, %cst_51 [1] : vector<2x2xf32> to vector<2xf32>
    %131 = vector.shape_cast %130 : vector<2xf32> to vector<2x1xf32>
    %132 = vector.broadcast %131 : vector<2x1xf32> to vector<2x2xf32>
    %133 = arith.subf %129, %132 : vector<2x2xf32>
    %134 = math.exp %133 : vector<2x2xf32>
    %cst_52 = arith.constant dense<0.000000e+00> : vector<2xf32>
    %135 = vector.multi_reduction <add>, %134, %cst_52 [1] : vector<2x2xf32> to vector<2xf32>
    %136 = vector.shape_cast %135 : vector<2xf32> to vector<2x1xf32>
    %137 = vector.broadcast %136 : vector<2x1xf32> to vector<2x2xf32>
    %138 = arith.divf %134, %137 : vector<2x2xf32>
    %c0_53 = arith.constant 0 : index
    %c0_54 = arith.constant 0 : index
    %139 = vector.load %arg15[%c0_53, %c0_54] : memref<2x2xf32, #tpu.memory_space<vmem>>, vector<2x2xf32>
    tpu.vector_store %arg15[%c0_53, %c0_54], %138 {strides = array<i32>} : memref<2x2xf32, #tpu.memory_space<vmem>>, vector<2x2xf32>,
    return
  }
}

</mosaic_0001>

<bundles_post_ra>
// kernel: forward.1
= control target key start
LH: loop header
LB: loop body
LE: loop exit
PB: predicated region body
PF: predicated region fallthrough
CT: control target
= control target key end

     0   :  { %v2429_v2 = vmov 0   ;;  %v2430_v14 = vmov 0.0   ;;  %vm2431_vm0 = vmmov 0   ;;  %s3053_s0 = inlined_call_operand.vmem [shape: s32[64,1], index: 0, kind: input, shape index: {}]   ;;  %s3054_s1 = inlined_call_operand.vmem [shape: bf16[128,32], index: 1, kind: input, shape index: {}]   ;;  %s3055_s2 = inlined_call_operand.vmem [shape: bf16[32,32], index: 2, kind: input, shape index: {}]   ;;  %s3056_s3 = inlined_call_operand.vmem [shape: f32[1,32], index: 3, kind: input, shape index: {}]   ;;  %s3057_s4 = inlined_call_operand.vmem [shape: bf16[32,32], index: 4, kind: input, shape index: {}]   ;;  %s3058_s5 = inlined_call_operand.vmem [shape: bf16[32,32], index: 5, kind: input, shape index: {}]   ;;  %s3059_s6 = inlined_call_operand.vmem [shape: f32[1,32], index: 6, kind: input, shape index: {}]   ;;  %s3060_s7 = inlined_call_operand.vmem [shape: bf16[32,300], index: 7, kind: input, shape index: {}]   ;;  %s3061_s8 = inlined_call_operand.vmem [shape: f32[1,300], index: 8, kind: input, shape index: {}]   ;;  %s3062_s9 = inlined_call_operand.vmem [shape: bf16[300,2], index: 9, kind: input, shape index: {}]   ;;  %s3063_s10 = inlined_call_operand.vmem [shape: f32[1,2], index: 10, kind: input, shape index: {}]   ;;  %s3064_s11 = inlined_call_operand.vmem [shape: f32[64,2], index: 11, kind: input, shape index: {}]   ;;  %s3065_s12 = inlined_call_operand.vmem [shape: f32[64,2], index: 12, kind: input, shape index: {}]   ;;  %s3066_s13 = inlined_call_operand.vmem [shape: f32[2,64], index: 13, kind: input, shape index: {}]   ;;  %s3067_s14 = inlined_call_operand.vmem [shape: f32[1,2], index: 14, kind: input, shape index: {}]   ;;  %s3068_s15 = inlined_call_operand.hbm [shape: f32[2,2], index: 15, kind: output, shape index: {}]  }
   0x1   :  { %v54_v0 = vld [vmem:[%s3053_s0 + $0x10] sm:$0xff]  ;;  %v52_v1 = vld [vmem:[%s3053_s0] sm:$0xff]  ;;  %2315 = vset.pattern.permute.xlu1 %v2429_v2  ;;  %2314 = vset.pattern.permute.xlu0 %v2429_v2  ;;  %v55_v3 = vld [vmem:[%s3053_s0 + $0x18] sm:$0xff] }
   0x2   :  { %69 = vperm.xlu1 %2315, %v54_v0   ;;  %63 = vperm.xlu0 %2314, %v52_v1   ;;  %v53_v4 = vld [vmem:[%s3053_s0 + $0x8] sm:$0xff]  ;;  %v2328_v5 = vld [vmem:[%s3054_s1] sm:$0xff]   ;;  %v2330_v9 = vld [vmem:[%s3054_s1 + $0x10] sm:$0xff]  }
   0x3   :  { %v2329_v6 = vld [vmem:[%s3054_s1 + $0x8] sm:$0xff]   ;;  %2085 = vmatprep.subr.bf16.mxu0 %v2328_v5  ;;  %v56_v8 = vld [vmem:[%s3053_s0 + $0x20] sm:$0xff]  ;;  %v59_v10 = vld [vmem:[%s3053_s0 + $0x38] sm:$0xff]  ;;  %2117 = vmatprep.subr.bf16.mxu1 %v2430_v14 }
   0x4   :  { %v57_v7 = vld [vmem:[%s3053_s0 + $0x28] sm:$0xff]  ;;  %2086 = vmatpush3.bf16.msra.mxu0 %v2328_v5  ;;  %v58_v11 = vld [vmem:[%s3053_s0 + $0x30] sm:$0xff]  ;;  %v2331_v12 = vld [vmem:[%s3054_s1 + $0x18] sm:$0xff]   ;;  %2121 = vmatprep.mubr.msk.bf16.mxu1 %vm2431_vm0, %v2430_v14 }
   0x5   :  { %2087 = vmatprep.subr.bf16.mxu0 %v2329_v6  ;;  %v2557_v13 = vld [vmem:[%s3055_s2] sm:$0xff]   ;;  %v2333_v16 = vld [vmem:[%s3054_s1 + $0x28] sm:$0xff]   ;;  %v2334_v18 = vld [vmem:[%s3054_s1 + $0x30] sm:$0xff]  }
   0x6   :  { %72 = vperm.xlu1 %2315, %v55_v3   ;;  %66 = vperm.xlu0 %2314, %v53_v4   ;;  %v2332_v15 = vld [vmem:[%s3054_s1 + $0x20] sm:$0xff]   ;;  %v2571_v17 = vld [vmem:[%s3055_s2 + $0x8] sm:$0xff]   ;;  %v2335_v19 = vld [vmem:[%s3054_s1 + $0x38] sm:$0xff]  }
   0x7   :  { %2118 = vmatpush3.bf16.msra.mxu1 %v2557_v13 }
   0x8   :  { %2088 = vmatpush3.bf16.msra.mxu0 %v2329_v6  ;;  %2119 = vmatprep.subr.bf16.mxu1 %v2430_v14 }
   0x9   :  { %2089 = vmatprep.subr.bf16.mxu0 %v2330_v9 }
   0xa   :  { %78 = vperm.xlu1 %2315, %v57_v7   ;;  %75 = vperm.xlu0 %2314, %v56_v8  }
   0xb   :  { %2120 = vmatpush3.bf16.msra.mxu1 %v2571_v17 }
   0xc   :  { %2090 = vmatpush3.bf16.msra.mxu0 %v2330_v9  ;;  %2125 = vmatprep.subr.bf16.mxu1 %v2430_v14 }
   0xd   :  { %2091 = vmatprep.subr.bf16.mxu0 %v2331_v12 }
   0xe   :  { %84 = vperm.xlu1 %2315, %v59_v10   ;;  %81 = vperm.xlu0 %2314, %v58_v11  }
  0x10   :  { %2092 = vmatpush3.bf16.msra.mxu0 %v2331_v12 }
  0x11   :  { %2093 = vmatprep.subr.bf16.mxu0 %v2332_v15 }
  0x14   :  { %2094 = vmatpush3.bf16.msra.mxu0 %v2332_v15 }
  0x15   :  { %2095 = vmatprep.subr.bf16.mxu0 %v2333_v16 }
  0x18   :  { %2096 = vmatpush3.bf16.msra.mxu0 %v2333_v16 }
  0x19   :  { %2097 = vmatprep.subr.bf16.mxu0 %v2334_v18 }
  0x1a   :  { %20 = vsyncpa [#allocation3], 0  ;;  %v60_v20 = vlaneseq  ;;  %v2432_v26 = vmov 1.0|1.0   ;;  %v1875_v31 = vld [vmem:[%s3056_s3] ss:$0 sm:$0xff] }
  0x1b   :  { %vm266_vm13 = vcmask 261120   ;;  %vm1512_vm14 = vcmask 1045504   ;;  %vm1499_vm15 = vcmask 359424  }
  0x1c   :  { %2098 = vmatpush3.bf16.msra.mxu0 %v2334_v18  ;;  %v61_v23 = vand.u32 127, %v60_v20 }
  0x1d   :  { %2099 = vmatprep.subr.bf16.mxu0 %v2335_v19 }
  0x20   :  { %2100 = vmatpush3.bf16.msra.mxu0 %v2335_v19 }
  0x21   :  { %2109 = vmatprep.subr.bf16.mxu0 %v2430_v14 }
  0x81   :  { %v70_v21 = vpop.permute.xlu1 %69  ;;  %v64_v22 = vpop.permute.xlu0 %63 }
  0x82   :  { %vm88_vm1 = vcmp.eq.s32.totalorder %v61_v23, %v70_v21  ;;  %vm86_vm4 = vcmp.eq.s32.totalorder %v61_v23, %v64_v22 }
  0x85   :  { %v73_v24 = vpop.permute.xlu1 %72  ;;  %v67_v25 = vpop.permute.xlu0 %66 }
  0x86   :  { %vm89_vm2 = vcmp.eq.s32.totalorder %v61_v23, %v73_v24  ;;  %vm87_vm3 = vcmp.eq.s32.totalorder %v61_v23, %v67_v25  ;;  %v2338_v24 = vld [vmem:[%s3057_s4] sm:$0xff]  }
  0x87   :  { %vm1886_vm5 = vmpackc.low %vm89_vm2, %vm88_vm1  ;;  %vm1840_vm1 = vcmask 9216  }
  0x88   :  { %vm1884_vm6 = vmpackc.low %vm87_vm3, %vm86_vm4 }
  0x89   :  { %2101 = vmatprep.mubr.msk.bf16.mxu0 %vm1884_vm6, %v2432_v26  ;;  %v79_v27 = vpop.permute.xlu1 %78  ;;  %v76_v28 = vpop.permute.xlu0 %75 }
  0x8a   :  { %vm91_vm7 = vcmp.eq.s32.totalorder %v61_v23, %v79_v27  ;;  %2102 = vmatmul.mubr.msk.bf16.vlgmr.msra.gmra.mrb[0].mxu0 %vm1886_vm5, %v2432_v26  ;;  %vm90_vm8 = vcmp.eq.s32.totalorder %v61_v23, %v76_v28 }
  0x8b   :  { %vm1888_vm9 = vmpackc.low %vm91_vm7, %vm90_vm8  ;;  %2110 = vmatpush3.bf16.msra.mxu0 %v2557_v13 }
  0x8c   :  { %2105 = vmatprep.mubr.msk.bf16.mxu0 %vm1888_vm9, %v2432_v26  ;;  %2111 = vmatprep.subr.bf16.mxu0 %v2430_v14 }
  0x8d   :  { %v85_v29 = vpop.permute.xlu1 %84  ;;  %v82_v30 = vpop.permute.xlu0 %81 }
  0x8e   :  { %vm93_vm10 = vcmp.eq.s32.totalorder %v61_v23, %v85_v29  ;;  %vm92_vm11 = vcmp.eq.s32.totalorder %v61_v23, %v82_v30 }
  0x8f   :  { %vm1890_vm12 = vmpackc.low %vm93_vm10, %vm92_vm11  ;;  %2112 = vmatpush3.bf16.msra.mxu0 %v2571_v17 }
  0x90   :  { %2149 = vmatprep.subr.bf16.mxu0 %v2430_v14 }
  0x92   :  { %2106 = vmatmul.mubr.msk.bf16.gmra.mrb[4].mxu0 %vm1890_vm12, %v2432_v26 }
  0x93   :  { %2113 = vmatprep.mubr.msk.bf16.mxu0 %vm2431_vm0, %v2430_v14 }
  0x9a   :  { %2114 = vmatmul.mubr.bf16.vlgmr.msra.gmra.mrb[8].mxu0 %v2429_v2 }
  0x9b   :  { %2150 = vmatpush3.bf16.msra.mxu0 %v2557_v13  ;;  %2153 = vmatprep.mubr.msk.bf16.mxu0 %vm2431_vm0, %v2430_v14 }
  0x9c   :  { %2151 = vmatprep.subr.bf16.mxu0 %v2430_v14 }
  0x9f   :  { %2152 = vmatpush3.bf16.msra.mxu0 %v2571_v17 }
  0xa0   :  { %2165 = vmatprep.subr.bf16.mxu0 %v2430_v14 }
 0x15d   :  { %v2103_v32 = vpop.f32.mrb[0].mxu0 }
 0x15e   :  { %v228_v33 = vadd.f32 %v2103_v32, %v1875_v31  ;;  %v219_v34 = vpop.f32.mrb[1].mxu0 }
 0x15f   :  { %v2104_v35 = vpop.f32.mrb[2].mxu0  ;;  %v220_v47 = vadd.f32 %v1875_v31, %v219_v34  ;;  %v2669_v34 = vld [vmem:[%s3058_s5] sm:$0xff]  }
 0x160   :  { %v231_v36 = vadd.f32 %v2104_v35, %v1875_v31  ;;  %v222_v37 = vpop.f32.mrb[3].mxu0  ;;  %v2676_v35 = vld [vmem:[%s3058_s5 + $0x8] sm:$0xff]  }
 0x161   :  { %v223_v38 = vadd.f32 %v1875_v31, %v222_v37 }
 0x165   :  { %v2107_v39 = vpop.f32.mrb[4].mxu0 }
 0x166   :  { %v2601_v40 = vadd.f32 %v2107_v39, %v1875_v31  ;;  %v235_v41 = vpop.f32.mrb[5].mxu0 }
 0x167   :  { %v2603_v42 = vadd.f32 %v1875_v31, %v235_v41  ;;  %v2108_v43 = vpop.f32.mrb[6].mxu0 }
 0x168   :  { %v2605_v44 = vadd.f32 %v2108_v43, %v1875_v31  ;;  %v238_v45 = vpop.f32.mrb[7].mxu0 }
 0x169   :  { %v2607_v46 = vadd.f32 %v1875_v31, %v238_v45 }
 0x16d   :  { %v304_v48 = vpop.f32.mrb[8].mxu0 }
 0x16e   :  { %v310_v49 = vadd.f32 %v304_v48, %v220_v47  ;;  %v2115_v50 = vpop.f32.mrb[9].mxu0 }
 0x16f   :  { %v307_v51 = vpop.f32.mrb[10].mxu0 }
 0x170   :  { %2369 = vtanh.f32 %v310_v49  ;;  %v2116_v52 = vpop.f32.mrb[11].mxu0 }
 0x17a   :  { %v2609_v53 = vpop.eup %2369 }
 0x17b   :  { %v312_v54 = vpack.c.bf16 %v2609_v53, %v2609_v53 }
 0x17d   :  { %2122 = vmatmul.mubr.msk.bf16.vlgmr.msra.gmra.mrb[0].mxu1 %vm266_vm13, %v312_v54 }
 0x17e   :  { %2126 = vmatpush3.bf16.msra.mxu1 %v2557_v13  ;;  %2129 = vmatprep.mubr.msk.bf16.mxu1 %vm2431_vm0, %v2430_v14 }
 0x17f   :  { %2127 = vmatprep.subr.bf16.mxu1 %v2430_v14 }
 0x182   :  { %2128 = vmatpush3.bf16.msra.mxu1 %v2571_v17 }
 0x183   :  { %2133 = vmatprep.subr.bf16.mxu1 %v2430_v14 }
 0x250   :  { %v350_v55 = vpop.f32.mrb[0].mxu1 }
 0x251   :  { %v356_v56 = vadd.f32 %v350_v55, %v223_v38  ;;  %v2123_v57 = vpop.f32.mrb[1].mxu1 }
 0x252   :  { %v353_v58 = vpop.f32.mrb[2].mxu1 }
 0x253   :  { %2371 = vtanh.f32 %v356_v56  ;;  %v2124_v59 = vpop.f32.mrb[3].mxu1 }
 0x25d   :  { %v2620_v60 = vpop.eup %2371 }
 0x25e   :  { %v358_v61 = vpack.c.bf16 %v2620_v60, %v2620_v60  ;;  %v634_v31 = vpack.c.bf16 %v2620_v60, %v2609_v53  ;;  %v2703_v53 = vld [vmem:[%s3059_s6] ss:$0 sm:$0xff] }
 0x260   :  { %2130 = vmatmul.mubr.msk.bf16.vlgmr.msra.gmra.mrb[4].mxu1 %vm266_vm13, %v358_v61 }
 0x261   :  { %2134 = vmatpush3.bf16.msra.mxu1 %v2557_v13  ;;  %2137 = vmatprep.mubr.msk.bf16.mxu1 %vm2431_vm0, %v2430_v14 }
 0x262   :  { %2135 = vmatprep.subr.bf16.mxu1 %v2430_v14 }
 0x265   :  { %2136 = vmatpush3.bf16.msra.mxu1 %v2571_v17 }
 0x266   :  { %2141 = vmatprep.subr.bf16.mxu1 %v2430_v14 }
 0x333   :  { %v396_v62 = vpop.f32.mrb[4].mxu1 }
 0x334   :  { %v402_v63 = vadd.f32 %v396_v62, %v228_v33  ;;  %v2131_v0 = vpop.f32.mrb[5].mxu1 }
 0x335   :  { %v399_v1 = vpop.f32.mrb[6].mxu1 }
 0x336   :  { %2373 = vtanh.f32 %v402_v63  ;;  %v2132_v3 = vpop.f32.mrb[7].mxu1 }
 0x340   :  { %v2374_v4 = vpop.eup %2373 }
 0x341   :  { %v404_v5 = vpack.c.bf16 %v2374_v4, %v2374_v4 }
 0x343   :  { %2138 = vmatmul.mubr.msk.bf16.vlgmr.msra.gmra.mrb[8].mxu1 %vm266_vm13, %v404_v5 }
 0x344   :  { %2142 = vmatpush3.bf16.msra.mxu1 %v2557_v13  ;;  %2145 = vmatprep.mubr.msk.bf16.mxu1 %vm2431_vm0, %v2430_v14 }
 0x345   :  { %2143 = vmatprep.subr.bf16.mxu1 %v2430_v14 }
 0x348   :  { %2144 = vmatpush3.bf16.msra.mxu1 %v2571_v17 }
 0x349   :  { %2157 = vmatprep.subr.bf16.mxu1 %v2430_v14 }
 0x416   :  { %v442_v6 = vpop.f32.mrb[8].mxu1 }
 0x417   :  { %v448_v7 = vadd.f32 %v442_v6, %v231_v36  ;;  %v2139_v8 = vpop.f32.mrb[9].mxu1 }
 0x418   :  { %v445_v9 = vpop.f32.mrb[10].mxu1 }
 0x419   :  { %2375 = vtanh.f32 %v448_v7  ;;  %v2140_v10 = vpop.f32.mrb[11].mxu1 }
 0x423   :  { %v2376_v11 = vpop.eup %2375 }
 0x424   :  { %v450_v12 = vpack.c.bf16 %v2376_v11, %v2376_v11  ;;  %v635_v32 = vpack.c.bf16 %v2376_v11, %v2374_v4 }
 0x426   :  { %2146 = vmatmul.mubr.msk.bf16.vlgmr.msra.gmra.mrb[12].mxu1 %vm266_vm13, %v450_v12 }
 0x427   :  { %2158 = vmatpush3.bf16.msra.mxu1 %v2557_v13  ;;  %2161 = vmatprep.mubr.msk.bf16.mxu1 %vm2431_vm0, %v2430_v14 }
 0x428   :  { %2159 = vmatprep.subr.bf16.mxu1 %v2430_v14 }
 0x42b   :  { %2160 = vmatpush3.bf16.msra.mxu1 %v2571_v17 }
 0x42c   :  { %2173 = vmatprep.subr.bf16.mxu1 %v2338_v24 }
 0x4f9   :  { %v488_v15 = vpop.f32.mrb[12].mxu1 }
 0x4fa   :  { %v494_v16 = vadd.f32 %v488_v15, %v2603_v42  ;;  %v2147_v18 = vpop.f32.mrb[13].mxu1 }
 0x4fb   :  { %v491_v19 = vpop.f32.mrb[14].mxu1 }
 0x4fc   :  { %2377 = vtanh.f32 %v494_v16  ;;  %v2148_v21 = vpop.f32.mrb[15].mxu1 }
 0x506   :  { %v2378_v22 = vpop.eup %2377 }
 0x507   :  { %v496_v23 = vpack.c.bf16 %v2378_v22, %v2378_v22 }
 0x509   :  { %2154 = vmatmul.mubr.msk.bf16.vlgmr.msra.gmra.mrb[12].mxu0 %vm266_vm13, %v496_v23 }
 0x50a   :  { %2166 = vmatpush3.bf16.msra.mxu0 %v2557_v13  ;;  %2169 = vmatprep.mubr.msk.bf16.mxu0 %vm2431_vm0, %v2430_v14 }
 0x50b   :  { %2167 = vmatprep.subr.bf16.mxu0 %v2430_v14 }
 0x50e   :  { %2168 = vmatpush3.bf16.msra.mxu0 %v2571_v17  ;;  %v2339_v17 = vld [vmem:[%s3057_s4 + $0x8] sm:$0xff]  }
 0x50f   :  { %2185 = vmatprep.subr.bf16.mxu0 %v2430_v14 }
 0x5dc   :  { %v534_v25 = vpop.f32.mrb[12].mxu0 }
 0x5dd   :  { %v540_v26 = vadd.f32 %v534_v25, %v2607_v46  ;;  %v2155_v27 = vpop.f32.mrb[13].mxu0 }
 0x5de   :  { %v537_v28 = vpop.f32.mrb[14].mxu0 }
 0x5df   :  { %2379 = vtanh.f32 %v540_v26  ;;  %v2156_v13 = vpop.f32.mrb[15].mxu0 }
 0x5e9   :  { %v2380_v29 = vpop.eup %2379 }
 0x5ea   :  { %v542_v30 = vpack.c.bf16 %v2380_v29, %v2380_v29  ;;  %v636_v33 = vpack.c.bf16 %v2380_v29, %v2378_v22 }
 0x5ec   :  { %2162 = vmatmul.mubr.msk.bf16.vlgmr.msra.gmra.mrb[16].mxu1 %vm266_vm13, %v542_v30 }
 0x5ed   :  { %2174 = vmatpush3.bf16.msra.mxu1 %v2338_v24  ;;  %2177 = vmatprep.mubr.msk.bf16.mxu1 %vm266_vm13, %v634_v31 }
 0x5ee   :  { %2175 = vmatprep.subr.bf16.mxu1 %v2339_v17 }
 0x5f1   :  { %2176 = vmatpush3.bf16.msra.mxu1 %v2339_v17 }
 0x5f2   :  { %2201 = vmatprep.subr.bf16.mxu1 %v2430_v14 }
 0x5f4   :  { %2178 = vmatmul.mubr.msk.bf16.vlgmr.msra.gmra.mrb[20].mxu1 %vm266_vm13, %v635_v32 }
 0x5f5   :  { %2181 = vmatprep.mubr.msk.bf16.mxu1 %vm266_vm13, %v636_v33  ;;  %2202 = vmatpush3.bf16.msra.mxu1 %v2669_v34 }
 0x5f6   :  { %2203 = vmatprep.subr.bf16.mxu1 %v2430_v14 }
 0x5f9   :  { %2204 = vmatpush3.bf16.msra.mxu1 %v2676_v35 }
 0x5fa   :  { %2217 = vmatprep.subr.bf16.mxu1 %v2430_v14 }
 0x6bf   :  { %v580_v36 = vpop.f32.mrb[16].mxu1 }
 0x6c0   :  { %v586_v37 = vadd.f32 %v580_v36, %v2601_v40  ;;  %v2163_v38 = vpop.f32.mrb[17].mxu1 }
 0x6c1   :  { %v583_v39 = vpop.f32.mrb[18].mxu1 }
 0x6c2   :  { %2381 = vtanh.f32 %v586_v37  ;;  %v2164_v41 = vpop.f32.mrb[19].mxu1 }
 0x6c3   :  { %v2344_v41 = vld [vmem:[%s3060_s7 + $0x4] ss:$12 sps:$4 sm:$0xff]  }
 0x6c7   :  { %v2681_v42 = vpop.f32.mrb[20].mxu1 }
 0x6c8   :  { %v707_v43 = vpop.f32.mrb[21].mxu1  ;;  %v716_v12 = vadd.f32 %v2681_v42, %v2703_v53 }
 0x6c9   :  { %v2683_v45 = vpop.f32.mrb[22].mxu1  ;;  %v708_v54 = vadd.f32 %v2703_v53, %v707_v43 }
 0x6ca   :  { %v710_v46 = vpop.f32.mrb[23].mxu1  ;;  %v719_v24 = vadd.f32 %v2683_v45, %v2703_v53 }
 0x6cb   :  { %v711_v4 = vadd.f32 %v2703_v53, %v710_v46 }
 0x6cc   :  { %v2382_v47 = vpop.eup %2381 }
 0x6cd   :  { %v588_v48 = vpack.c.bf16 %v2382_v47, %v2382_v47 }
 0x6cf   :  { %2170 = vmatmul.mubr.msk.bf16.vlgmr.msra.gmra.mrb[16].mxu0 %vm266_vm13, %v588_v48 }
 0x6d0   :  { %2186 = vmatpush3.bf16.msra.mxu0 %v2669_v34  ;;  %2189 = vmatprep.mubr.msk.bf16.mxu0 %vm2431_vm0, %v2430_v14 }
 0x6d1   :  { %2187 = vmatprep.subr.bf16.mxu0 %v2430_v14 }
 0x6d4   :  { %2188 = vmatpush3.bf16.msra.mxu0 %v2676_v35 }
 0x6d5   :  { %2193 = vmatprep.subr.bf16.mxu0 %v2430_v14 }
 0x6d7   :  { %2190 = vmatmul.mubr.bf16.vlgmr.msra.gmra.mrb[20].mxu0 %v2429_v2 }
 0x6d8   :  { %2194 = vmatpush3.bf16.msra.mxu0 %v2669_v34  ;;  %2197 = vmatprep.mubr.msk.bf16.mxu0 %vm2431_vm0, %v2430_v14 }
 0x6d9   :  { %2195 = vmatprep.subr.bf16.mxu0 %v2430_v14 }
 0x6dc   :  { %2196 = vmatpush3.bf16.msra.mxu0 %v2676_v35 }
 0x6dd   :  { %2209 = vmatprep.subr.bf16.mxu0 %v2430_v14 }
 0x7a2   :  { %v626_v40 = vpop.f32.mrb[16].mxu0 }
 0x7a3   :  { %v632_v49 = vadd.f32 %v626_v40, %v2605_v44  ;;  %v2171_v50 = vpop.f32.mrb[17].mxu0  ;;  %v2342_v40 = vld [vmem:[%s3060_s7] ss:$12 sps:$4 sm:$0xff]  }
 0x7a4   :  { %v629_v51 = vpop.f32.mrb[18].mxu0  ;;  %v2345_v50 = vld [vmem:[%s3060_s7 + $0x18] ss:$12 sps:$4 sm:$0xff]  }
 0x7a5   :  { %2383 = vtanh.f32 %v632_v49  ;;  %v2172_v52 = vpop.f32.mrb[19].mxu0 }
 0x7aa   :  { %v788_v55 = vpop.f32.mrb[20].mxu0 }
 0x7ab   :  { %v794_v56 = vadd.f32 %v788_v55, %v708_v54  ;;  %v2191_v57 = vpop.f32.mrb[21].mxu0  ;;  %v2348_v55 = vld [vmem:[%s3060_s7 + $0x8] ss:$12 sps:$4 sm:$0xff]  }
 0x7ac   :  { %v791_v58 = vpop.f32.mrb[22].mxu0  ;;  %v2351_v57 = vld [vmem:[%s3062_s9] sm:$0xff]  }
 0x7ad   :  { %2385 = vtanh.f32 %v794_v56  ;;  %v2192_v59 = vpop.f32.mrb[23].mxu0  ;;  %v2350_v56 = vld [vmem:[%s3062_s9 + $0x40] sm:$0xff]   ;;  %v2352_v58 = vld [vmem:[%s3062_s9 + $0x48] sm:$0xff]  }
 0x7ae   :  { %v2353_v59 = vld [vmem:[%s3062_s9 + $0x8] sm:$0xff]  }
 0x7af   :  { %v2384_v60 = vpop.eup %2383 }
 0x7b0   :  { %v637_v61 = vpack.c.bf16 %v2384_v60, %v2382_v47  ;;  %v2799_v60 = vshrl.u32 %v60_v20, 7 }
 0x7b2   :  { %2182 = vmatmul.mubr.msk.bf16.gmra.mrb[24].mxu1 %vm266_vm13, %v637_v61 }
 0x7b3   :  { %2205 = vmatprep.mubr.msk.bf16.mxu1 %vm2431_vm0, %v2430_v14 }
 0x7b7   :  { %v2709_v44 = vpop.eup %2385 }
 0x7b8   :  { %v796_v62 = vpack.c.bf16 %v2709_v44, %v2709_v44 }
 0x7ba   :  { %2198 = vmatmul.mubr.msk.bf16.vlgmr.msra.gmra.mrb[24].mxu0 %vm266_vm13, %v796_v62 }
 0x7bb   :  { %2210 = vmatpush3.bf16.msra.mxu0 %v2669_v34  ;;  %2213 = vmatprep.mubr.msk.bf16.mxu0 %vm2431_vm0, %v2430_v14 }
 0x7bc   :  { %2211 = vmatprep.subr.bf16.mxu0 %v2430_v14 }
 0x7bf   :  { %2212 = vmatpush3.bf16.msra.mxu0 %v2676_v35 }
 0x7c0   :  { %2225 = vmatprep.subr.bf16.mxu0 %v2430_v14 }
 0x885   :  { %v2720_v63 = vpop.f32.mrb[24].mxu1 }
 0x886   :  { %v723_v0 = vpop.f32.mrb[25].mxu1  ;;  %v732_v61 = vadd.f32 %v2720_v63, %v2703_v53 }
 0x887   :  { %v2722_v1 = vpop.f32.mrb[26].mxu1  ;;  %v724_v17 = vadd.f32 %v2703_v53, %v723_v0 }
 0x888   :  { %v726_v3 = vpop.f32.mrb[27].mxu1 }
 0x889   :  { %v727_v42 = vadd.f32 %v2703_v53, %v726_v3 }
 0x88d   :  { %v834_v5 = vpop.f32.mrb[24].mxu0 }
 0x88e   :  { %v840_v6 = vadd.f32 %v834_v5, %v711_v4  ;;  %v2199_v7 = vpop.f32.mrb[25].mxu0  ;;  %v1134_v5 = vsub.s32 0, %v2799_v60 }
 0x88f   :  { %v837_v8 = vpop.f32.mrb[26].mxu0  ;;  %v1138_v7 = vsub.s32 1, %v2799_v60 }
 0x890   :  { %2387 = vtanh.f32 %v840_v6  ;;  %v2200_v9 = vpop.f32.mrb[27].mxu0  ;;  %v2807_v6 = vld [vmem:[%s3061_s8] sm:$0x7] }
 0x891   :  { %v2811_v20 = vrot.slane %v2807_v6, %v1134_v5  ;;  %v2814_v63 = vrot.slane %v2807_v6, %v1138_v7  ;;  %v1142_v7 = vsub.s32 2, %v2799_v60 }
 0x89a   :  { %v2725_v10 = vpop.eup %2387 }
 0x89b   :  { %v842_v11 = vpack.c.bf16 %v2725_v10, %v2725_v10  ;;  %v1118_v51 = vpack.c.bf16 %v2725_v10, %v2709_v44 }
 0x89d   :  { %2206 = vmatmul.mubr.msk.bf16.vlgmr.msra.gmra.mrb[28].mxu1 %vm266_vm13, %v842_v11 }
 0x89e   :  { %2218 = vmatpush3.bf16.msra.mxu1 %v2669_v34  ;;  %2221 = vmatprep.mubr.msk.bf16.mxu1 %vm2431_vm0, %v2430_v14 }
 0x89f   :  { %2219 = vmatprep.subr.bf16.mxu1 %v2430_v14 }
 0x8a2   :  { %2220 = vmatpush3.bf16.msra.mxu1 %v2676_v35 }
 0x8a3   :  { %2233 = vmatprep.subr.bf16.mxu1 %v2430_v14 }
 0x970   :  { %v880_v15 = vpop.f32.mrb[28].mxu1 }
 0x971   :  { %v886_v16 = vadd.f32 %v880_v15, %v716_v12  ;;  %v2207_v18 = vpop.f32.mrb[29].mxu1 }
 0x972   :  { %v883_v19 = vpop.f32.mrb[30].mxu1 }
 0x973   :  { %2389 = vtanh.f32 %v886_v16  ;;  %v2208_v21 = vpop.f32.mrb[31].mxu1 }
 0x97d   :  { %v2390_v22 = vpop.eup %2389 }
 0x97e   :  { %v888_v23 = vpack.c.bf16 %v2390_v22, %v2390_v22 }
 0x980   :  { %2214 = vmatmul.mubr.msk.bf16.vlgmr.msra.gmra.mrb[28].mxu0 %vm266_vm13, %v888_v23 }
 0x981   :  { %2226 = vmatpush3.bf16.msra.mxu0 %v2669_v34  ;;  %2229 = vmatprep.mubr.msk.bf16.mxu0 %vm2431_vm0, %v2430_v14 }
 0x982   :  { %2227 = vmatprep.subr.bf16.mxu0 %v2430_v14 }
 0x985   :  { %2228 = vmatpush3.bf16.msra.mxu0 %v2676_v35 }
 0x986   :  { %2241 = vmatprep.subr.bf16.mxu0 %v2430_v14 }
 0xa53   :  { %v926_v25 = vpop.f32.mrb[28].mxu0 }
 0xa54   :  { %v932_v26 = vadd.f32 %v926_v25, %v719_v24  ;;  %v2215_v27 = vpop.f32.mrb[29].mxu0  ;;  %v2349_v24 = vld [vmem:[%s3060_s7 + $0x20] ss:$12 sps:$4 sm:$0xff]  }
 0xa55   :  { %v929_v28 = vpop.f32.mrb[30].mxu0 }
 0xa56   :  { %2391 = vtanh.f32 %v932_v26  ;;  %v2216_v13 = vpop.f32.mrb[31].mxu0 }
 0xa60   :  { %v2392_v29 = vpop.eup %2391 }
 0xa61   :  { %v934_v30 = vpack.c.bf16 %v2392_v29, %v2392_v29  ;;  %v1119_v52 = vpack.c.bf16 %v2392_v29, %v2390_v22 }
 0xa63   :  { %2222 = vmatmul.mubr.msk.bf16.vlgmr.msra.gmra.mrb[32].mxu1 %vm266_vm13, %v934_v30 }
 0xa64   :  { %2234 = vmatpush3.bf16.msra.mxu1 %v2669_v34  ;;  %2237 = vmatprep.mubr.msk.bf16.mxu1 %vm2431_vm0, %v2430_v14 }
 0xa65   :  { %2235 = vmatprep.subr.bf16.mxu1 %v2430_v14 }
 0xa68   :  { %2236 = vmatpush3.bf16.msra.mxu1 %v2676_v35 }
 0xa69   :  { %1191 = vmatprep.subr.bf16.mxu1 %v2344_v41 }
 0xb36   :  { %v972_v31 = vpop.f32.mrb[32].mxu1 }
 0xb37   :  { %v978_v32 = vadd.f32 %v972_v31, %v724_v17  ;;  %v2223_v33 = vpop.f32.mrb[33].mxu1 }
 0xb38   :  { %v975_v36 = vpop.f32.mrb[34].mxu1 }
 0xb39   :  { %2393 = vtanh.f32 %v978_v32  ;;  %v2224_v37 = vpop.f32.mrb[35].mxu1 }
 0xb43   :  { %v2394_v38 = vpop.eup %2393 }
 0xb44   :  { %v980_v39 = vpack.c.bf16 %v2394_v38, %v2394_v38 }
 0xb46   :  { %2230 = vmatmul.mubr.msk.bf16.vlgmr.msra.gmra.mrb[32].mxu0 %vm266_vm13, %v980_v39 }
 0xb47   :  { %2242 = vmatpush3.bf16.msra.mxu0 %v2669_v34  ;;  %2245 = vmatprep.mubr.msk.bf16.mxu0 %vm2431_vm0, %v2430_v14 }
 0xb48   :  { %2243 = vmatprep.subr.bf16.mxu0 %v2430_v14 }
 0xb4b   :  { %2244 = vmatpush3.bf16.msra.mxu0 %v2676_v35  ;;  %v2347_v35 = vld [vmem:[%s3060_s7 + $0x1c] ss:$12 sps:$4 sm:$0xff]  }
 0xb4c   :  { %2249 = vmatprep.subr.bf16.mxu0 %v2348_v55 }
 0xc19   :  { %v1018_v43 = vpop.f32.mrb[32].mxu0 }
 0xc1a   :  { %v1024_v45 = vadd.f32 %v1018_v43, %v727_v42  ;;  %v2231_v46 = vpop.f32.mrb[33].mxu0 }
 0xc1b   :  { %v1021_v47 = vpop.f32.mrb[34].mxu0 }
 0xc1c   :  { %2395 = vtanh.f32 %v1024_v45  ;;  %v2232_v34 = vpop.f32.mrb[35].mxu0  ;;  %v2354_v47 = vld [vmem:[%s3062_s9 + $0x50] sm:$0xff]  }
 0xc1d   :  { %v2355_v34 = vld [vmem:[%s3062_s9 + $0x10] sm:$0xff]  }
 0xc26   :  { %v2396_v48 = vpop.eup %2395 }
 0xc27   :  { %v1026_v49 = vpack.c.bf16 %v2396_v48, %v2396_v48  ;;  %v1120_v54 = vpack.c.bf16 %v2396_v48, %v2394_v38  ;;  %v2356_v48 = vld [vmem:[%s3062_s9 + $0x58] sm:$0xff]  }
 0xc29   :  { %2238 = vmatmul.mubr.msk.bf16.vlgmr.msra.gmra.mrb[36].mxu1 %vm266_vm13, %v1026_v49  ;;  %v2358_v49 = vld [vmem:[%s3062_s9 + $0x60] sm:$0xff]  }
 0xc2a   :  { %1192 = vmatpush1.bf16.msra.mxu1 %v2342_v40  ;;  %1223 = vmatprep.mubr.bf16.mxu1 %v2429_v2  ;;  %v2357_v40 = vld [vmem:[%s3062_s9 + $0x18] sm:$0xff]  }
 0xc2b   :  { %1193 = vmatprep.subr.bf16.mxu1 %v2347_v35  ;;  %v2359_v35 = vld [vmem:[%s3062_s9 + $0x20] sm:$0xff]  }
 0xc2e   :  { %1194 = vmatpush1.bf16.msra.mxu1 %v2345_v50  ;;  %v2360_v50 = vld [vmem:[%s3062_s9 + $0x68] sm:$0xff]  }
 0xc2f   :  { %2029 = vmatprep.subr.bf16.mxu1 %v2350_v56  ;;  %v2365_v56 = vld [vmem:[%s3062_s9 + $0x30] sm:$0xff]  }
 0xc31   :  { %1923 = vmatmul.mubr.msk.bf16.vlgmr.msra.gmra.mrb[40].mxu1 %vm266_vm13, %v1118_v51 }
 0xc32   :  { %1233 = vmatprep.mubr.bf16.mxu1 %v2429_v2  ;;  %2030 = vmatpush3.bf16.msra.mxu1 %v2351_v57  ;;  %v2366_v57 = vld [vmem:[%s3062_s9 + $0x78] sm:$0xff]  }
 0xc33   :  { %2031 = vmatprep.subr.bf16.mxu1 %v2352_v58  ;;  %v2367_v58 = vld [vmem:[%s3062_s9 + $0x90] sm:$0x3f]  }
 0xc36   :  { %2032 = vmatpush3.bf16.msra.mxu1 %v2353_v59  ;;  %v2368_v59 = vld [vmem:[%s3062_s9 + $0x38] sm:$0xff]  }
 0xc37   :  { %2033 = vmatprep.subr.bf16.mxu1 %v2354_v47 }
 0xc39   :  { %1924 = vmatmul.mubr.msk.bf16.gmra.mrb[44].mxu1 %vm266_vm13, %v1119_v52 }
 0xc3a   :  { %1243 = vmatprep.mubr.bf16.mxu1 %v2429_v2  ;;  %2034 = vmatpush3.bf16.msra.mxu1 %v2355_v34 }
 0xc3b   :  { %2035 = vmatprep.subr.bf16.mxu1 %v2356_v48 }
 0xc3e   :  { %2036 = vmatpush3.bf16.msra.mxu1 %v2357_v40 }
 0xc3f   :  { %2037 = vmatprep.subr.bf16.mxu1 %v2358_v49 }
 0xc41   :  { %1925 = vmatmul.mubr.msk.bf16.gmra.mrb[48].mxu1 %vm266_vm13, %v1120_v54 }
 0xc42   :  { %1253 = vmatprep.mubr.bf16.mxu1 %v2429_v2  ;;  %2038 = vmatpush3.bf16.msra.mxu1 %v2359_v35 }
 0xc43   :  { %2039 = vmatprep.subr.bf16.mxu1 %v2360_v50 }
 0xcfc   :  { %v1064_v44 = vpop.f32.mrb[36].mxu1 }
 0xcfd   :  { %v1070_v62 = vadd.f32 %v1064_v44, %v732_v61  ;;  %v2239_v0 = vpop.f32.mrb[37].mxu1  ;;  %v1514_v61 = vsel %vm1512_vm14, %v2367_v58, 0  ;;  %v735_v44 = vadd.f32 %v2722_v1, %v2703_v53 }
 0xcfe   :  { %v1067_v3 = vpop.f32.mrb[38].mxu1 }
 0xcff   :  { %2397 = vtanh.f32 %v1070_v62  ;;  %v2240_v4 = vpop.f32.mrb[39].mxu1 }
 0xd04   :  { %v1225_v8 = vpop.f32.mrb[40].mxu1 }
 0xd05   :  { %v1227_v9 = vpop.f32.mrb[41].mxu1  ;;  %v2817_v11 = vadd.f32 %v1225_v8, %v2811_v20  ;;  %v1143_v8 = vrot.slane %v2807_v6, %v1142_v7 }
 0xd06   :  { %v1229_v10 = vpop.f32.mrb[42].mxu1  ;;  %v2823_v16 = vadd.f32 %v1227_v9, %v2814_v63 }
 0xd07   :  { %v2820_v12 = vadd.f32 %v1229_v10, %v2811_v20  ;;  %v1231_v15 = vpop.f32.mrb[43].mxu1 }
 0xd08   :  { %v2826_v18 = vadd.f32 %v1231_v15, %v2814_v63 }
 0xd09   :  { %v2828_v19 = vpop.eup %2397  ;;  %v1329_v21 = vpack.c.bf16 %v2820_v12, %v2817_v11 }
 0xd0a   :  { %v1330_v22 = vpack.c.bf16 %v2826_v18, %v2823_v16  ;;  %v1072_v23 = vpack.c.bf16 %v2828_v19, %v2828_v19 }
 0xd0c   :  { %2246 = vmatmul.mubr.msk.bf16.vlgmr.msra.gmra.mrb[36].mxu0 %vm266_vm13, %v1072_v23  ;;  %v1235_v25 = vpop.f32.mrb[44].mxu1 }
 0xd0d   :  { %v1237_v26 = vpop.f32.mrb[45].mxu1  ;;  %2250 = vmatpush3.bf16.msra.mxu0 %v2348_v55  ;;  %2253 = vmatprep.mubr.msk.bf16.mxu0 %vm266_vm13, %v1118_v51  ;;  %v2842_v28 = vadd.f32 %v1235_v25, %v2811_v20  ;;  %v2361_v51 = vld [vmem:[%s3062_s9 + $0x80] sm:$0xff]   ;;  %v2364_v55 = vld [vmem:[%s3062_s9 + $0x88] sm:$0xff]  }
 0xd0e   :  { %v1239_v27 = vpop.f32.mrb[46].mxu1  ;;  %2251 = vmatprep.subr.bf16.mxu0 %v2349_v24  ;;  %v2848_v30 = vadd.f32 %v1237_v26, %v2814_v63 }
 0xd0f   :  { %v2845_v13 = vadd.f32 %v1239_v27, %v2811_v20  ;;  %v1241_v29 = vpop.f32.mrb[47].mxu1 }
 0xd10   :  { %v2851_v17 = vadd.f32 %v1241_v29, %v2814_v63 }
 0xd11   :  { %v1332_v31 = vpack.c.bf16 %v2845_v13, %v2842_v28  ;;  %2252 = vmatpush3.bf16.msra.mxu0 %v2349_v24 }
 0xd12   :  { %v1333_v32 = vpack.c.bf16 %v2851_v17, %v2848_v30  ;;  %2261 = vmatprep.subr.bf16.mxu0 %v2361_v51 }
 0xd14   :  { %v1245_v33 = vpop.f32.mrb[48].mxu1  ;;  %2254 = vmatmul.mubr.msk.bf16.vlgmr.msra.gmra.mrb[40].mxu0 %vm266_vm13, %v1119_v52  ;;  %v2362_v52 = vld [vmem:[%s3062_s9 + $0x28] sm:$0xff]  }
 0xd15   :  { %v1247_v36 = vpop.f32.mrb[49].mxu1  ;;  %2257 = vmatprep.mubr.msk.bf16.mxu0 %vm266_vm13, %v1120_v54  ;;  %v2860_v38 = vadd.f32 %v1245_v33, %v2811_v20  ;;  %2040 = vmatpush3.bf16.msra.mxu1 %v2362_v52  ;;  %v2363_v54 = vld [vmem:[%s3062_s9 + $0x70] sm:$0xff]  }
 0xd16   :  { %v1249_v37 = vpop.f32.mrb[50].mxu1  ;;  %v2866_v42 = vadd.f32 %v1247_v36, %v2814_v63  ;;  %2262 = vmatpush3.bf16.msra.mxu0 %v2361_v51  ;;  %2041 = vmatprep.subr.bf16.mxu1 %v2363_v54 }
 0xd17   :  { %v2863_v39 = vadd.f32 %v1249_v37, %v2811_v20  ;;  %v1251_v41 = vpop.f32.mrb[51].mxu1  ;;  %2263 = vmatprep.subr.bf16.mxu0 %v2364_v55 }
 0xd18   :  { %v2869_v43 = vadd.f32 %v1251_v41, %v2814_v63 }
 0xd19   :  { %v1335_v45 = vpack.c.bf16 %v2863_v39, %v2860_v38  ;;  %2042 = vmatpush3.bf16.msra.mxu1 %v2365_v56 }
 0xd1a   :  { %v1336_v46 = vpack.c.bf16 %v2869_v43, %v2866_v42  ;;  %2264 = vmatpush3.bf16.msra.mxu0 %v2364_v55  ;;  %2043 = vmatprep.subr.bf16.mxu1 %v2366_v57 }
 0xd1b   :  { %2306 = vmatprep.subr.msk.bf16.mxu0 %vm1512_vm14, %v2367_v58 }
 0xd1d   :  { %2044 = vmatpush3.bf16.msra.mxu1 %v2368_v59 }
 0xd1e   :  { %2266 = vmatpush3.bf16.msra.mxu0 %v1514_v61 }
 0xddf   :  { %v1110_v62 = vpop.f32.mrb[36].mxu0 }
 0xde0   :  { %v1116_v0 = vadd.f32 %v1110_v62, %v735_v44  ;;  %v2247_v3 = vpop.f32.mrb[37].mxu0 }
 0xde1   :  { %v1113_v4 = vpop.f32.mrb[38].mxu0 }
 0xde2   :  { %2399 = vtanh.f32 %v1116_v0  ;;  %v2248_v5 = vpop.f32.mrb[39].mxu0 }
 0xde7   :  { %v2255_v9 = vpop.f32.mrb[40].mxu0 }
 0xde8   :  { %v1298_v10 = vpop.f32.mrb[41].mxu0  ;;  %v1307_v23 = vadd.f32 %v2255_v9, %v1143_v8 }
 0xde9   :  { %v2256_v15 = vpop.f32.mrb[42].mxu0  ;;  %v1299_v26 = vadd.f32 %v1298_v10, %v1143_v8  ;;  %v2434_v10 = vmov 0.0|0.0  }
 0xdea   :  { %v1310_v24 = vadd.f32 %v2256_v15, %v1143_v8  ;;  %v1301_v25 = vpop.f32.mrb[43].mxu0  ;;  %2294 = vmatprep.subr.bf16.mxu0 %v2434_v10 }
 0xdeb   :  { %v1302_v27 = vadd.f32 %v1301_v25, %v1143_v8  ;;  %v1646_v25 = vld [vmem:[%s3064_s11] sm:$0xff] }
 0xdec   :  { %v2400_v29 = vpop.eup %2399  ;;  %v1334_v53 = vpack.c.bf16 %v1310_v24, %v1307_v23  ;;  %v1702_v24 = vld [vmem:[%s3065_s12] sm:$0xff] }
 0xded   :  { %v1331_v1 = vpack.c.bf16 %v1302_v27, %v1299_v26  ;;  %v1121_v33 = vpack.c.bf16 %v2400_v29, %v2828_v19  ;;  %v1647_v26 = vld [vmem:[%s3064_s11 + $0x8] sm:$0xff] }
 0xdee   :  { %v1703_v29 = vld [vmem:[%s3065_s12 + $0x8] sm:$0xff] }
 0xdef   :  { %1926 = vmatmul.mubr.msk.bf16.gmra.mrb[52].mxu1 %vm266_vm13, %v1121_v33  ;;  %2258 = vmatmul.mubr.msk.bf16.gmra.mrb[44].mxu0 %vm266_vm13, %v1121_v33 }
 0xdf0   :  { %1548 = vmatprep.mubr.bf16.mxu1 %v1330_v22  ;;  %2267 = vmatprep.mubr.msk.bf16.mxu0 %vm1499_vm15, %v1331_v1 }
 0xdf7   :  { %1549 = vmatmul.mubr.bf16.vlgmr.msra.gmra.mrb[56].mxu1 %v1329_v21  ;;  %2268 = vmatmul.mubr.msk.bf16.vlgmr.msra.gmra.mrb[48].mxu0 %vm1499_vm15, %v1334_v53 }
 0xdf8   :  { %1556 = vmatprep.mubr.bf16.mxu1 %v1333_v32 }
 0xdff   :  { %1557 = vmatmul.mubr.bf16.gmra.mrb[60].mxu1 %v1332_v31 }
 0xe00   :  { %1564 = vmatprep.mubr.bf16.mxu1 %v1336_v46 }
 0xe07   :  { %1565 = vmatmul.mubr.bf16.gmra.mrb[64].mxu1 %v1335_v45 }
 0xec2   :  { %v1255_v60 = vpop.f32.mrb[52].mxu1  ;;  %v2259_v6 = vpop.f32.mrb[44].mxu0 }
 0xec3   :  { %v1257_v11 = vpop.f32.mrb[53].mxu1  ;;  %v1314_v12 = vpop.f32.mrb[45].mxu0  ;;  %v1256_v19 = vadd.f32 %v1255_v60, %v2811_v20  ;;  %v1323_v21 = vadd.f32 %v2259_v6, %v1143_v8 }
 0xec4   :  { %v1259_v16 = vpop.f32.mrb[54].mxu1  ;;  %v2260_v18 = vpop.f32.mrb[46].mxu0  ;;  %v1258_v17 = vadd.f32 %v1257_v11, %v2814_v63  ;;  %v1315_v31 = vadd.f32 %v1314_v12, %v1143_v8 }
 0xec5   :  { %v1260_v22 = vadd.f32 %v1259_v16, %v2811_v20  ;;  %v1326_v28 = vadd.f32 %v2260_v18, %v1143_v8  ;;  %v1261_v13 = vpop.f32.mrb[55].mxu1  ;;  %v1317_v30 = vpop.f32.mrb[47].mxu0  ;;  %v2955_v20 = vld [vmem:[%s3063_s10] ss:$0 sm:$0xff] }
 0xec6   :  { %v1262_v32 = vadd.f32 %v1261_v13, %v2814_v63  ;;  %v1318_v36 = vadd.f32 %v1317_v30, %v1143_v8  ;;  %v1648_v13 = vld [vmem:[%s3064_s11 + $0x10] sm:$0xff]  ;;  %v1705_v30 = vld [vmem:[%s3065_s12 + $0x18] sm:$0xff] }
 0xec7   :  { %v1338_v37 = vpack.c.bf16 %v1260_v22, %v1256_v19  ;;  %v1340_v38 = vpack.c.bf16 %v1326_v28, %v1323_v21  ;;  %v1704_v19 = vld [vmem:[%s3065_s12 + $0x10] sm:$0xff]  ;;  %v1649_v22 = vld [vmem:[%s3064_s11 + $0x18] sm:$0xff] }
 0xec8   :  { %v1339_v39 = vpack.c.bf16 %v1262_v32, %v1258_v17  ;;  %v1337_v41 = vpack.c.bf16 %v1318_v36, %v1315_v31 }
 0xeca   :  { %v2045_v42 = vpop.f32.mrb[56].mxu1  ;;  %1572 = vmatprep.mubr.bf16.mxu1 %v1339_v39  ;;  %v2269_v43 = vpop.f32.mrb[48].mxu0  ;;  %2271 = vmatprep.mubr.msk.bf16.mxu0 %vm1499_vm15, %v1337_v41 }
 0xecb   :  { %v2046_v45 = vpop.f32.mrb[57].mxu1  ;;  %1573 = vmatmul.mubr.bf16.gmra.mrb[68].mxu1 %v1338_v37  ;;  %v1615_v46 = vpop.f32.mrb[49].mxu0  ;;  %2272 = vmatmul.mubr.msk.bf16.gmra.mrb[52].mxu0 %vm1499_vm15, %v1340_v38 }
 0xecc   :  { %v2047_v63 = vadd.f32 %v2046_v45, %v2045_v42  ;;  %v2048_v47 = vpop.f32.mrb[58].mxu1  ;;  %v2270_v34 = vpop.f32.mrb[50].mxu0  ;;  %2291 = vmatprep.mubr.msk.f32.mxu0 %vm2431_vm0, %v2430_v14  ;;  %v2433_v14 = vmov 1   ;;  %vm1766_vm0 = vcmask 523264  }
 0xecd   :  { %v2049_v48 = vpop.f32.mrb[59].mxu1  ;;  %v1618_v40 = vpop.f32.mrb[51].mxu0 }
 0xece   :  { %v1551_v49 = vadd.f32 %v2047_v63, %v2955_v20  ;;  %v2050_v35 = vadd.f32 %v2049_v48, %v2048_v47 }
 0xed0   :  { %v1616_v50 = vadd.f32 %v1615_v46, %v1551_v49  ;;  %v1554_v51 = vadd.f32 %v2050_v35, %v2955_v20 }
 0xed2   :  { %v1619_v52 = vadd.f32 %v1618_v40, %v1554_v51  ;;  %v2051_v54 = vpop.f32.mrb[60].mxu1  ;;  %1656 = vperm.xlu0 %2314, %v1616_v50  }
 0xed3   :  { %v2052_v55 = vpop.f32.mrb[61].mxu1 }
 0xed4   :  { %v2053_v56 = vadd.f32 %v2052_v55, %v2051_v54  ;;  %v2054_v57 = vpop.f32.mrb[62].mxu1  ;;  %1661 = vperm.xlu1 %2315, %v1619_v52  }
 0xed5   :  { %v2055_v58 = vpop.f32.mrb[63].mxu1 }
 0xed6   :  { %v1559_v59 = vadd.f32 %v2053_v56, %v2955_v20  ;;  %v2056_v61 = vadd.f32 %v2055_v58, %v2054_v57  ;;  %2316 = vset.pattern.permute.xlu0 %v2433_v14 }
 0xed7   :  { %1711 = vperm.xlu0 %2316, %v1616_v50  }
 0xed8   :  { %v1562_v44 = vadd.f32 %v2056_v61, %v2955_v20  ;;  %2317 = vset.pattern.permute.xlu1 %v2433_v14  ;;  %v1624_v62 = vadd.f32 %v2269_v43, %v1559_v59  ;;  %v1706_v59 = vld [vmem:[%s3065_s12 + $0x20] sm:$0xff] }
 0xed9   :  { %1715 = vperm.xlu1 %2317, %v1619_v52   ;;  %v1650_v61 = vld [vmem:[%s3064_s11 + $0x20] sm:$0xff] }
 0xeda   :  { %v2057_v0 = vpop.f32.mrb[64].mxu1  ;;  %v1627_v3 = vadd.f32 %v2270_v34, %v1562_v44 }
 0xedb   :  { %v2058_v4 = vpop.f32.mrb[65].mxu1  ;;  %2320 = vset.pattern.permute.xlu0 %v2429_v2 }
 0xedc   :  { %v2059_v5 = vadd.f32 %v2058_v4, %v2057_v0  ;;  %v2060_v7 = vpop.f32.mrb[66].mxu1  ;;  %1671 = vperm.xlu0 %2320, %v1627_v3  }
 0xedd   :  { %v2061_v8 = vpop.f32.mrb[67].mxu1  ;;  %2318 = vset.pattern.permute.xlu1 %v2429_v2 }
 0xede   :  { %v2062_v9 = vadd.f32 %v2061_v8, %v2060_v7  ;;  %1666 = vperm.xlu1 %2318, %v1624_v62   ;;  %v1567_v45 = vadd.f32 %v2059_v5, %v2955_v20 }
 0xee0   :  { %v1570_v49 = vadd.f32 %v2062_v9, %v2955_v20 }
 0xee2   :  { %2319 = vset.pattern.permute.xlu1 %v2433_v14 }
 0xee3   :  { %1719 = vperm.xlu1 %2319, %v1624_v62  }
 0xee7   :  { %1723 = vperm.xlu1 %2319, %v1627_v3  }
 0xeeb   :  { %2322 = vset.pattern.permute.xlu1 %v2429_v2 }
 0xf51   :  { %v1657_v15 = vpop.permute.xlu0 %1656 }
 0xf52   :  { %v1694_v33 = vmul.f32 %v1657_v15, %v1646_v25  ;;  %v1653_v25 = vld [vmem:[%s3064_s11 + $0x38] sm:$0xff] }
 0xf53   :  { %v1662_v23 = vpop.permute.xlu1 %1661 }
 0xf54   :  { %v1695_v60 = vmul.f32 %v1662_v23, %v1647_v26  ;;  %v1708_v23 = vld [vmem:[%s3065_s12 + $0x30] sm:$0xff] }
 0xf56   :  { %v1712_v27 = vpop.permute.xlu0 %1711 }
 0xf57   :  { %v1742_v53 = vmul.f32 %v1712_v27, %v1702_v24  ;;  %v1652_v27 = vld [vmem:[%s3064_s11 + $0x30] sm:$0xff] }
 0xf58   :  { %v1716_v1 = vpop.permute.xlu1 %1715 }
 0xf59   :  { %v1743_v6 = vmul.f32 %v1716_v1, %v1703_v29  ;;  %v1750_v11 = vadd.f32 %v1742_v53, %v1694_v33  ;;  %v1709_v29 = vld [vmem:[%s3065_s12 + $0x38] sm:$0xff] }
 0xf5b   :  { %v1751_v12 = vadd.f32 %v1743_v6, %v1695_v60  ;;  %v1672_v28 = vpop.permute.xlu0 %1671 }
 0xf5c   :  { %v1697_v32 = vmul.f32 %v1672_v28, %v1649_v22 }
 0xf5d   :  { %v2295_v16 = vpack.c.bf16 %v1751_v12, %v1750_v11  ;;  %v1667_v18 = vpop.permute.xlu1 %1666 }
 0xf5e   :  { %v1696_v36 = vmul.f32 %v1667_v18, %v1648_v13  ;;  %v1955_v18 = vld [vmem:[%s3067_s14] ss:$0 sm:$0xff] }
 0xf5f   :  { %2296 = vmatpush3.bf16.msra.mxu0 %v2295_v16  ;;  %v1758_v16 = vld [vmem:[%s3066_s13] sm:$0x3] }
 0xf60   :  { %2297 = vmatprep.subr.bf16.mxu0 %v2434_v10 }
 0xf62   :  { %v1720_v21 = vpop.permute.xlu1 %1719 }
 0xf63   :  { %v1744_v17 = vmul.f32 %v1720_v21, %v1704_v19 }
 0xf65   :  { %v1752_v38 = vadd.f32 %v1744_v17, %v1696_v36 }
 0xf66   :  { %v1724_v31 = vpop.permute.xlu1 %1723 }
 0xf67   :  { %v1745_v37 = vmul.f32 %v1724_v31, %v1705_v30 }
 0xf69   :  { %v1753_v39 = vadd.f32 %v1745_v37, %v1697_v32 }
 0xf6b   :  { %v2298_v41 = vpack.c.bf16 %v1753_v39, %v1752_v38 }
 0xf6d   :  { %2299 = vmatpush3.bf16.msra.mxu0 %v2298_v41 }
 0xf6e   :  { %2300 = vmatprep.subr.bf16.mxu0 %v2434_v10 }
 0xf9e   :  { %v2063_v42 = vpop.f32.mrb[68].mxu1  ;;  %v2273_v43 = vpop.f32.mrb[52].mxu0 }
 0xf9f   :  { %v2064_v46 = vpop.f32.mrb[69].mxu1  ;;  %v1631_v63 = vpop.f32.mrb[53].mxu0 }
 0xfa0   :  { %v2065_v47 = vadd.f32 %v2064_v46, %v2063_v42  ;;  %v1632_v34 = vadd.f32 %v1631_v63, %v1567_v45  ;;  %v2066_v48 = vpop.f32.mrb[70].mxu1  ;;  %v2274_v40 = vpop.f32.mrb[54].mxu0 }
 0xfa1   :  { %v2067_v35 = vpop.f32.mrb[71].mxu1  ;;  %v1634_v50 = vpop.f32.mrb[55].mxu0 }
 0xfa2   :  { %v1575_v51 = vadd.f32 %v2065_v47, %v2955_v20  ;;  %v2068_v52 = vadd.f32 %v2067_v35, %v2066_v48  ;;  %v1635_v54 = vadd.f32 %v1634_v50, %v1570_v49  ;;  %1676 = vperm.xlu0 %2320, %v1632_v34  }
 0xfa4   :  { %v1578_v55 = vadd.f32 %v2068_v52, %v2955_v20  ;;  %1681 = vperm.xlu1 %2322, %v1635_v54   ;;  %v1640_v56 = vadd.f32 %v2273_v43, %v1575_v51 }
 0xfa6   :  { %2321 = vset.pattern.permute.xlu0 %v2433_v14  ;;  %v1643_v57 = vadd.f32 %v2274_v40, %v1578_v55 }
 0xfa7   :  { %1727 = vperm.xlu0 %2321, %v1632_v34  }
 0xfa8   :  { %2323 = vset.pattern.permute.xlu1 %v2433_v14 }
 0xfa9   :  { %1731 = vperm.xlu1 %2323, %v1635_v54  }
 0xfab   :  { %2325 = vset.pattern.permute.xlu0 %v2429_v2 }
 0xfac   :  { %1691 = vperm.xlu0 %2325, %v1643_v57  }
 0xfad   :  { %2324 = vset.pattern.permute.xlu1 %v2429_v2  ;;  %v1651_v2 = vld [vmem:[%s3064_s11 + $0x28] sm:$0xff] }
 0xfae   :  { %1686 = vperm.xlu1 %2324, %v1640_v56  }
 0xfb0   :  { %2327 = vset.pattern.permute.xlu0 %v2433_v14 }
 0xfb2   :  { %2326 = vset.pattern.permute.xlu1 %v2433_v14  ;;  %v1707_v14 = vld [vmem:[%s3065_s12 + $0x28] sm:$0xff]  ;;  %s2435_s12 = smov [#allocation2]  }
 0xfb3   :  { %1735 = vperm.xlu1 %2326, %v1640_v56   ;;  %s1859_s13 = sshll.u32 %s2435_s12, 4  ;;  %s1860_s13 = int_to_ptr.vmem [resolvable:$true] %s1859_s13 }
 0xfb4   :  { %s2405_s14 = scalar_lea.vmem %s1860_s13, 32  ;;  %p2410_p1 = scmp.lt.s32.totalorder %s1860_s13, %s1860_s13 }
 0xfb5   :  { %p2406_p0 = scmp.ne.s32.totalorder %s1860_s13, %s2405_s14  ;;  %p2411_p2 = scmp.lt.s32.totalorder %s2405_s14, %s2405_s14 }
 0xfb7   :  { %1739 = vperm.xlu1 %2326, %v1643_v57   ;;  %p2412_p3 = por %p2411_p2, %p2410_p1 }
 0xfb9   :  { %p2413_p4 = pnand %p2412_p3, %p2406_p0 }
0x1021   :  { %v1677_v20 = vpop.permute.xlu0 %1676 }
0x1022   :  { %v1698_v3 = vmul.f32 %v1677_v20, %v1650_v61 }
0x1023   :  { %v1682_v58 = vpop.permute.xlu1 %1681 }
0x1024   :  { %v1699_v4 = vmul.f32 %v1682_v58, %v1651_v2 }
0x1026   :  { %v1728_v44 = vpop.permute.xlu0 %1727 }
0x1027   :  { %v1746_v62 = vmul.f32 %v1728_v44, %v1706_v59 }
0x1028   :  { %v1732_v0 = vpop.permute.xlu1 %1731 }
0x1029   :  { %v1747_v5 = vmul.f32 %v1732_v0, %v1707_v14  ;;  %v1754_v7 = vadd.f32 %v1746_v62, %v1698_v3 }
0x102b   :  { %v1755_v8 = vadd.f32 %v1747_v5, %v1699_v4  ;;  %v1692_v26 = vpop.permute.xlu0 %1691 }
0x102c   :  { %v1701_v1 = vmul.f32 %v1692_v26, %v1653_v25 }
0x102d   :  { %v2301_v9 = vpack.c.bf16 %v1755_v8, %v1754_v7  ;;  %v1687_v15 = vpop.permute.xlu1 %1686 }
0x102e   :  { %v1700_v33 = vmul.f32 %v1687_v15, %v1652_v27 }
0x102f   :  { %2302 = vmatpush3.bf16.msra.mxu0 %v2301_v9 }
0x1030   :  { %2303 = vmatprep.subr.bf16.mxu0 %v2434_v10 }
0x1032   :  { %v1736_v24 = vpop.permute.xlu1 %1735 }
0x1033   :  { %v1748_v53 = vmul.f32 %v1736_v24, %v1708_v23 }
0x1035   :  { %v1756_v6 = vadd.f32 %v1748_v53, %v1700_v33 }
0x1036   :  { %v1740_v10 = vpop.permute.xlu1 %1739 }
0x1037   :  { %v1749_v60 = vmul.f32 %v1740_v10, %v1709_v29 }
0x1039   :  { %v1757_v11 = vadd.f32 %v1749_v60, %v1701_v1 }
0x103b   :  { %v2304_v12 = vpack.c.bf16 %v1757_v11, %v1756_v6 }
0x103d   :  { %2305 = vmatpush3.bf16.msra.mxu0 %v2304_v12 }
0x1040   :  { %2292 = vmatmul.mubr.msk.f32.vlgmr.msra.gmra.mrb[56].mxu0 %vm1766_vm0, %v1758_v16 }
0x1113   :  { %v1836_v19 = vpop.f32.mrb[56].mxu0 }
0x1114   :  { %v1837_v21 = vadd.f32 %v1955_v18, %v1836_v19  ;;  %v2293_v22 = vpop.f32.mrb[57].mxu0 }
0x1116   :  { %v1841_v28 = vsel %vm1840_vm1, %v1837_v21, -inf }
0x1117   :  { %1842 = vmax.xlane.f32.xlu0 %v1841_v28 }
0x11a4   :  { %v1843_v13 = vpop.xlane.xlu0 %1842 }
0x11a5   :  { %v1844_v30 = vsub.f32 %v1837_v21, %v1843_v13 }
0x11a7   :  { %v1845_v17 = vmul.f32 1.442695, %v1844_v30 }
0x11a9   :  { %2401 = vpow2.f32 %v1845_v17 }
0x11b3   :  { %v2402_v31 = vpop.eup %2401 }
0x11b4   :  { %v1847_v32 = vsel %vm1840_vm1, %v2402_v31, 0.0 }
0x11b5   :  { %1848 = vadd.xlane.f32.xlu1 %v1847_v32 }
0x1242   :  { %v1849_v36 = vpop.xlane.xlu1 %1848 }
0x1243   :  { %2403 = vrcp.f32 %v1849_v36 }
0x124d   :  { %v2404_v37 = vpop.eup %2403 }
0x124e   :  { %v1851_v38 = vmul.f32 %v2404_v37, %v2402_v31 }
0x1250   :  { %1852 = vst.msk [vmem:[#allocation2] sm:$0x3] %vm1840_vm1, %v1851_v38 }
0x1251   :  { %2416 = shalt.err (!%p2413_p4)
}
0x1252   :  { %s2417_s25 = scalar_lea.hbm %s3068_s15, 32 }
0x1253   :  { %p2418_p5 = scmp.ne.s32.totalorder %s3068_s15, %s2417_s25  ;;  %p2421_p6 = scmp.lt.u32.totalorder %s2417_s25, %s3068_s15 }
0x1255   :  { %p2423_p7 = pnand %p2421_p6, %p2418_p5 }
0x1257   :  { %2426 = shalt.err (!%p2423_p7)
}
0x1258   :  { %1862 = dma.vmem_to_hbm [thread:$0]  %s1860_s13, 32, %s3068_s15, [#allocation3]  }
0x1259   :  { %2427 = dma.done.wait [#allocation3], 32  }
0x125a   :  { %2428 = vsyncadd [#allocation3], 4294967264 }
0x125b   :  { %1866 = vsyncpa [#allocation3], 1 }

</bundles_post_ra>
